<compile_context>
chip_gen: v7x
topology: tpu7x:2x2x1
jax: 0.10.0
libtpu: 0.0.40
codegen_flags: <defaults>
</compile_context>

<pallas_src>
import jax
import jax.numpy as jnp
from jax.experimental import pallas as pl
from jax.experimental.pallas import tpu as pltpu


def _coherent_dense_kernel(x_ref,                       # (n_ifos, tb, F)  compute dtype
                           w_init_ref, b_init_ref,      # (F, H) cdt, (1, H) f32
                           w_hid_ref, b_hid_ref,        # (L, H, H) cdt, (L, 1, H) f32
                           bn_scale_ref, bn_shift_ref,  # (L, n_ifos*tb, 1) f32
                           w_fc1_ref, b_fc1_ref,        # (H, C) cdt, (1, C) f32
                           w_fc2_ref, b_fc2_ref,        # (n_ifos*C, Cp) cdt, (1, Cp) f32
                           out_ref):                    # (tb, Cp)
    n_ifos, tb, _ = x_ref.shape
    n_hidden = w_hid_ref.shape[0]
    C = w_fc1_ref.shape[1]
    cdt = w_init_ref.dtype

    # Fold the ifo axis into the MXU row axis (ifo-major: rows [i*tb,(i+1)*tb)
    # hold ifo i).  tb is a multiple of 8, so this is a sublane-aligned concat.
    xf = jnp.concatenate([x_ref[i] for i in range(n_ifos)], axis=0)  # (rows, F)

    # initial_layer + ReLU  (one matmul for all ifos -- weights are shared)
    h = jnp.dot(xf, w_init_ref[...], preferred_element_type=jnp.float32)
    h = jnp.maximum(h + b_init_ref[...], 0.0)

    # hidden BasicBlocks: Linear -> BatchNorm1d (eval; per-row scale/shift) -> ReLU
    for l in range(n_hidden):                    # small & static -> unrolled
        h = jnp.dot(h.astype(cdt), w_hid_ref[l],
                    preferred_element_type=jnp.float32)
        h = h + b_hid_ref[l]
        h = h * bn_scale_ref[l] + bn_shift_ref[l]
        h = jnp.maximum(h, 0.0)

    # fc1 + ReLU  (ReLU commutes with the reshape in the PyTorch forward)
    h = jnp.dot(h.astype(cdt), w_fc1_ref[...],
                preferred_element_type=jnp.float32)
    h = jnp.maximum(h + b_fc1_ref[...], 0.0)     # (rows, C)

    # fc2 without the concat:  out = sum_i relu(h_i) @ w_fc2[i*C:(i+1)*C] + b
    # h_i is a contiguous, sublane-aligned row block (no cross-lane repack).
    acc = jnp.zeros((tb, out_ref.shape[1]), jnp.float32)
    for i in range(n_ifos):
        h_i = h[i * tb:(i + 1) * tb, :].astype(cdt)
        acc = acc + jnp.dot(h_i, w_fc2_ref[i * C:(i + 1) * C, :],
                            preferred_element_type=jnp.float32)
    out_ref[...] = (acc + b_fc2_ref[...]).astype(out_ref.dtype)


def coherent_dense_embedding(x, params, *, tile_b=None,
                             compute_dtype=jnp.float32):
    B, n_ifos, in_features = x.shape
    C = params["w_fc1"].shape[1]

    if tile_b is None:
        tile_b = min(B, 128)
        while B % tile_b:
            tile_b //= 2
    assert B % tile_b == 0 and tile_b % 8 == 0
    grid = (B // tile_b,)
    cdt = compute_dtype

    # ifo-major fold done once at the XLA level: (B, n_ifos, F) -> (n_ifos, B, F)
    xt = jnp.transpose(x, (1, 0, 2)).astype(cdt)

    # Lane-dense output stores: pad the output feature dim to a multiple of 128.
    Cp = ((C + 127) // 128) * 128
    w_fc2 = params["w_fc2"]
    b_fc2 = params["b_fc2"]
    if Cp != C:
        w_fc2 = jnp.pad(w_fc2, ((0, 0), (0, Cp - C)))
        b_fc2 = jnp.pad(b_fc2, ((0, 0), (0, Cp - C)))

    # Per-row BN scale/shift (rows grouped ifo-major, matching the fold above).
    bn_scale_rows = jnp.repeat(params["bn_scale"], tile_b, axis=1)[:, :, None]
    bn_shift_rows = jnp.repeat(params["bn_shift"], tile_b, axis=1)[:, :, None]

    # Weights/biases: whole-array VMEM residents (single copy, no per-step
    # revolving / double buffering).  At realistic n_samples sizes, recheck the
    # resident footprint against v7x's 64 MiB VMEM.
    def vmem():
        return pl.BlockSpec(memory_space=pltpu.MemorySpace.VMEM)

    in_specs = [
        pl.BlockSpec((n_ifos, tile_b, in_features), lambda b: (0, b, 0)),  # x
        vmem(),  # w_init
        vmem(),  # b_init
        vmem(),  # w_hidden
        vmem(),  # b_hidden
        vmem(),  # bn_scale_rows
        vmem(),  # bn_shift_rows
        vmem(),  # w_fc1
        vmem(),  # b_fc1
        vmem(),  # w_fc2 (padded)
        vmem(),  # b_fc2 (padded)
    ]
    out_spec = pl.BlockSpec((tile_b, Cp), lambda b: (b, 0))

    out = pl.pallas_call(
        _coherent_dense_kernel,
        out_shape=jax.ShapeDtypeStruct((B, Cp), x.dtype),
        grid=grid,
        in_specs=in_specs,
        out_specs=out_spec,
        compiler_params=pltpu.CompilerParams(
            dimension_semantics=("parallel",)),
    )(xt,
      params["w_init"].astype(cdt), params["b_init"],
      params["w_hidden"].astype(cdt), params["b_hidden"],
      bn_scale_rows, bn_shift_rows,
      params["w_fc1"].astype(cdt), params["b_fc1"],
      w_fc2.astype(cdt), b_fc2)
    return out[:, :C]


def init_params(key, n_ifos, in_features, hidden, context_dim, n_hidden):
    ks = jax.random.split(key, 4 + n_hidden)

    def linear(k, fan_in, fan_out):
        kw, kb = jax.random.split(k)
        lim = 1.0 / (fan_in ** 0.5)
        w = jax.random.uniform(kw, (fan_in, fan_out), jnp.float32, -lim, lim)
        b = jax.random.uniform(kb, (1, fan_out), jnp.float32, -lim, lim)
        return w, b

    w_init, b_init = linear(ks[0], in_features, hidden)

    w_hid, b_hid = [], []
    for l in range(n_hidden):
        w, b = linear(ks[1 + l], hidden, hidden)
        w_hid.append(w)
        b_hid.append(b)
    w_hid = jnp.stack(w_hid)                    # (L, H, H)
    b_hid = jnp.stack(b_hid)                    # (L, 1, H)

    w_fc1, b_fc1 = linear(ks[1 + n_hidden], hidden, context_dim)
    w_fc2, b_fc2 = linear(ks[2 + n_hidden], n_ifos * context_dim, context_dim)

    kg, kb2, km, kv = jax.random.split(ks[3 + n_hidden], 4)
    gamma = jax.random.uniform(kg, (n_hidden, n_ifos), jnp.float32, 0.5, 1.5)
    beta = jax.random.uniform(kb2, (n_hidden, n_ifos), jnp.float32, -0.2, 0.2)
    r_mean = jax.random.uniform(km, (n_hidden, n_ifos), jnp.float32, -0.2, 0.2)
    r_var = jax.random.uniform(kv, (n_hidden, n_ifos), jnp.float32, 0.8, 1.2)
    eps = 1e-5
    bn_scale = gamma / jnp.sqrt(r_var + eps)
    bn_shift = beta - r_mean * bn_scale

    return dict(w_init=w_init, b_init=b_init,
                w_hidden=w_hid, b_hidden=b_hid,
                bn_scale=bn_scale, bn_shift=bn_shift,
                w_fc1=w_fc1, b_fc1=b_fc1,
                w_fc2=w_fc2, b_fc2=b_fc2)


def reference(x, params):
    """Pure-JAX reference matching the PyTorch forward (BatchNorm in eval)."""
    h = jnp.einsum("bif,fh->bih", x, params["w_init"]) + params["b_init"]
    h = jax.nn.relu(h)
    L = params["w_hidden"].shape[0]
    for l in range(L):
        h = jnp.einsum("bih,hk->bik", h, params["w_hidden"][l]) + params["b_hidden"][l]
        h = h * params["bn_scale"][l][None, :, None] + params["bn_shift"][l][None, :, None]
        h = jax.nn.relu(h)
    h = jnp.einsum("bih,hc->bic", h, params["w_fc1"]) + params["b_fc1"]
    B = x.shape[0]
    h = h.reshape(B, 1, -1)
    h = jax.nn.relu(h)
    h = jnp.einsum("bic,cd->bid", h, params["w_fc2"]) + params["b_fc2"]
    return h.reshape(B, -1)


if __name__ == "__main__":
    B, n_ifos, in_features = 256, 2, 64
    hidden, context_dim, n_hidden = 32, 16, 2

    key = jax.random.PRNGKey(0)
    kx, kp = jax.random.split(key)
    x = jax.random.normal(kx, (B, n_ifos, in_features), jnp.float32)
    params = init_params(kp, n_ifos, in_features, hidden, context_dim, n_hidden)

    ref = reference(x, params)

    # fp32 path, 128-batch tiles (2 parallel grid steps -> both v7x TCs busy).
    out = coherent_dense_embedding(x, params, tile_b=128)
    out = jax.block_until_ready(out)
    assert out.shape == (B, context_dim), out.shape
    assert jnp.allclose(out, ref, atol=1e-4, rtol=1e-4), \
        float(jnp.max(jnp.abs(out - ref)))

    # bf16 MXU path (v6e/v7x): fp32 accumulation, looser tolerance vs fp32 ref.
    out_bf16 = coherent_dense_embedding(x, params, tile_b=128,
                                        compute_dtype=jnp.bfloat16)
    out_bf16 = jax.block_until_ready(out_bf16)
    assert jnp.allclose(out_bf16, ref, atol=5e-2, rtol=5e-2), \
        float(jnp.max(jnp.abs(out_bf16 - ref)))

    print("KERNEL_OK")
</pallas_src>

<mosaic_0001>
module attributes {stable_mosaic.version = 11 : i64} {
  func.func @_coherent_dense_kernel(%arg0: i32, %arg1: memref<2x128x64xf32, #tpu.memory_space<vmem>>, %arg2: memref<64x32xf32, #tpu.memory_space<vmem>>, %arg3: memref<1x32xf32, #tpu.memory_space<vmem>>, %arg4: memref<2x32x32xf32, #tpu.memory_space<vmem>>, %arg5: memref<2x1x32xf32, #tpu.memory_space<vmem>>, %arg6: memref<2x256x1xf32, #tpu.memory_space<vmem>>, %arg7: memref<2x256x1xf32, #tpu.memory_space<vmem>>, %arg8: memref<32x16xf32, #tpu.memory_space<vmem>>, %arg9: memref<1x16xf32, #tpu.memory_space<vmem>>, %arg10: memref<32x128xf32, #tpu.memory_space<vmem>>, %arg11: memref<1x128xf32, #tpu.memory_space<vmem>>, %arg12: memref<128x128xf32, #tpu.memory_space<vmem>>) attributes {dimension_semantics = [#tpu.dimension_semantics<parallel>], iteration_bounds = array<i64: 2>, scalar_prefetch = 0 : i64, scratch_operands = 0 : i64, tpu.core_type = #tpu.core_type<tc>, window_params = [{transform_indices = @transform_0, window_bounds = array<i64: 2, 128, 64>}, {pipeline_mode = #tpu.pipeline_mode<synchronous>, transform_indices = @transform_1, window_bounds = array<i64: 64, 32>}, {pipeline_mode = #tpu.pipeline_mode<synchronous>, transform_indices = @transform_2, window_bounds = array<i64: 1, 32>}, {pipeline_mode = #tpu.pipeline_mode<synchronous>, transform_indices = @transform_3, window_bounds = array<i64: 2, 32, 32>}, {pipeline_mode = #tpu.pipeline_mode<synchronous>, transform_indices = @transform_4, window_bounds = array<i64: 2, 1, 32>}, {pipeline_mode = #tpu.pipeline_mode<synchronous>, transform_indices = @transform_5, window_bounds = array<i64: 2, 256, 1>}, {pipeline_mode = #tpu.pipeline_mode<synchronous>, transform_indices = @transform_6, window_bounds = array<i64: 2, 256, 1>}, {pipeline_mode = #tpu.pipeline_mode<synchronous>, transform_indices = @transform_7, window_bounds = array<i64: 32, 16>}, {pipeline_mode = #tpu.pipeline_mode<synchronous>, transform_indices = @transform_8, window_bounds = array<i64: 1, 16>}, {pipeline_mode = #tpu.pipeline_mode<synchronous>, transform_indices = @transform_9, window_bounds = array<i64: 32, 128>}, {pipeline_mode = #tpu.pipeline_mode<synchronous>, transform_indices = @transform_10, window_bounds = array<i64: 1, 128>}, {transform_indices = @transform_11, window_bounds = array<i64: 128, 128>}]} {
    %c0 = arith.constant 0 : index
    %c0_0 = arith.constant 0 : index
    %c0_1 = arith.constant 0 : index
    %0 = vector.load %arg1[%c0, %c0_0, %c0_1] : memref<2x128x64xf32, #tpu.memory_space<vmem>>, vector<1x128x64xf32>
    %1 = vector.shape_cast %0 : vector<1x128x64xf32> to vector<128x64xf32>
    %c1 = arith.constant 1 : index
    %c0_2 = arith.constant 0 : index
    %c0_3 = arith.constant 0 : index
    %2 = vector.load %arg1[%c1, %c0_2, %c0_3] : memref<2x128x64xf32, #tpu.memory_space<vmem>>, vector<1x128x64xf32>
    %3 = vector.shape_cast %2 : vector<1x128x64xf32> to vector<128x64xf32>
    %4 = tpu.concatenate %1, %3 in 0 : vector<128x64xf32>, vector<128x64xf32> -> vector<256x64xf32>
    %c0_4 = arith.constant 0 : index
    %c0_5 = arith.constant 0 : index
    %5 = vector.load %arg2[%c0_4, %c0_5] : memref<64x32xf32, #tpu.memory_space<vmem>>, vector<64x32xf32>
    %cst = arith.constant dense<0.000000e+00> : vector<256x32xf32>
    %6 = tpu.matmul %4, %5, %cst {dimension_numbers = #tpu.dot_dimension_numbers<[1], [0], [0], [1], [0, 0, 1, 1], [], []>} : vector<256x64xf32>, vector<64x32xf32>, vector<256x32xf32> -> vector<256x32xf32>
    %c0_6 = arith.constant 0 : index
    %c0_7 = arith.constant 0 : index
    %7 = vector.load %arg3[%c0_6, %c0_7] : memref<1x32xf32, #tpu.memory_space<vmem>>, vector<1x32xf32>
    %8 = vector.broadcast %7 : vector<1x32xf32> to vector<256x32xf32>
    %9 = arith.addf %6, %8 : vector<256x32xf32>
    %cst_8 = arith.constant 0.000000e+00 : f32
    %10 = vector.broadcast %cst_8 : f32 to vector<256x32xf32>
    %11 = arith.maximumf %9, %10 : vector<256x32xf32>
    %c0_9 = arith.constant 0 : index
    %c0_10 = arith.constant 0 : index
    %c0_11 = arith.constant 0 : index
    %12 = vector.load %arg4[%c0_9, %c0_10, %c0_11] : memref<2x32x32xf32, #tpu.memory_space<vmem>>, vector<1x32x32xf32>
    %13 = vector.shape_cast %12 : vector<1x32x32xf32> to vector<32x32xf32>
    %cst_12 = arith.constant dense<0.000000e+00> : vector<256x32xf32>
    %14 = tpu.matmul %11, %13, %cst_12 {dimension_numbers = #tpu.dot_dimension_numbers<[1], [0], [0], [1], [0, 0, 1, 1], [], []>} : vector<256x32xf32>, vector<32x32xf32>, vector<256x32xf32> -> vector<256x32xf32>
    %c0_13 = arith.constant 0 : index
    %c0_14 = arith.constant 0 : index
    %c0_15 = arith.constant 0 : index
    %15 = vector.load %arg5[%c0_13, %c0_14, %c0_15] : memref<2x1x32xf32, #tpu.memory_space<vmem>>, vector<1x1x32xf32>
    %16 = vector.shape_cast %15 : vector<1x1x32xf32> to vector<1x32xf32>
    %17 = vector.broadcast %16 : vector<1x32xf32> to vector<256x32xf32>
    %18 = arith.addf %14, %17 : vector<256x32xf32>
    %c0_16 = arith.constant 0 : index
    %c0_17 = arith.constant 0 : index
    %c0_18 = arith.constant 0 : index
    %19 = vector.load %arg6[%c0_16, %c0_17, %c0_18] : memref<2x256x1xf32, #tpu.memory_space<vmem>>, vector<1x256x1xf32>
    %20 = vector.shape_cast %19 : vector<1x256x1xf32> to vector<256x1xf32>
    %21 = vector.broadcast %20 : vector<256x1xf32> to vector<256x32xf32>
    %22 = arith.mulf %18, %21 : vector<256x32xf32>
    %c0_19 = arith.constant 0 : index
    %c0_20 = arith.constant 0 : index
    %c0_21 = arith.constant 0 : index
    %23 = vector.load %arg7[%c0_19, %c0_20, %c0_21] : memref<2x256x1xf32, #tpu.memory_space<vmem>>, vector<1x256x1xf32>
    %24 = vector.shape_cast %23 : vector<1x256x1xf32> to vector<256x1xf32>
    %25 = vector.broadcast %24 : vector<256x1xf32> to vector<256x32xf32>
    %26 = arith.addf %22, %25 : vector<256x32xf32>
    %cst_22 = arith.constant 0.000000e+00 : f32
    %27 = vector.broadcast %cst_22 : f32 to vector<256x32xf32>
    %28 = arith.maximumf %26, %27 : vector<256x32xf32>
    %c1_23 = arith.constant 1 : index
    %c0_24 = arith.constant 0 : index
    %c0_25 = arith.constant 0 : index
    %29 = vector.load %arg4[%c1_23, %c0_24, %c0_25] : memref<2x32x32xf32, #tpu.memory_space<vmem>>, vector<1x32x32xf32>
    %30 = vector.shape_cast %29 : vector<1x32x32xf32> to vector<32x32xf32>
    %cst_26 = arith.constant dense<0.000000e+00> : vector<256x32xf32>
    %31 = tpu.matmul %28, %30, %cst_26 {dimension_numbers = #tpu.dot_dimension_numbers<[1], [0], [0], [1], [0, 0, 1, 1], [], []>} : vector<256x32xf32>, vector<32x32xf32>, vector<256x32xf32> -> vector<256x32xf32>
    %c1_27 = arith.constant 1 : index
    %c0_28 = arith.constant 0 : index
    %c0_29 = arith.constant 0 : index
    %32 = vector.load %arg5[%c1_27, %c0_28, %c0_29] : memref<2x1x32xf32, #tpu.memory_space<vmem>>, vector<1x1x32xf32>
    %33 = vector.shape_cast %32 : vector<1x1x32xf32> to vector<1x32xf32>
    %34 = vector.broadcast %33 : vector<1x32xf32> to vector<256x32xf32>
    %35 = arith.addf %31, %34 : vector<256x32xf32>
    %c1_30 = arith.constant 1 : index
    %c0_31 = arith.constant 0 : index
    %c0_32 = arith.constant 0 : index
    %36 = vector.load %arg6[%c1_30, %c0_31, %c0_32] : memref<2x256x1xf32, #tpu.memory_space<vmem>>, vector<1x256x1xf32>
    %37 = vector.shape_cast %36 : vector<1x256x1xf32> to vector<256x1xf32>
    %38 = vector.broadcast %37 : vector<256x1xf32> to vector<256x32xf32>
    %39 = arith.mulf %35, %38 : vector<256x32xf32>
    %c1_33 = arith.constant 1 : index
    %c0_34 = arith.constant 0 : index
    %c0_35 = arith.constant 0 : index
    %40 = vector.load %arg7[%c1_33, %c0_34, %c0_35] : memref<2x256x1xf32, #tpu.memory_space<vmem>>, vector<1x256x1xf32>
    %41 = vector.shape_cast %40 : vector<1x256x1xf32> to vector<256x1xf32>
    %42 = vector.broadcast %41 : vector<256x1xf32> to vector<256x32xf32>
    %43 = arith.addf %39, %42 : vector<256x32xf32>
    %cst_36 = arith.constant 0.000000e+00 : f32
    %44 = vector.broadcast %cst_36 : f32 to vector<256x32xf32>
    %45 = arith.maximumf %43, %44 : vector<256x32xf32>
    %c0_37 = arith.constant 0 : index
    %c0_38 = arith.constant 0 : index
    %46 = vector.load %arg8[%c0_37, %c0_38] : memref<32x16xf32, #tpu.memory_space<vmem>>, vector<32x16xf32>
    %cst_39 = arith.constant dense<0.000000e+00> : vector<256x16xf32>
    %47 = tpu.matmul %45, %46, %cst_39 {dimension_numbers = #tpu.dot_dimension_numbers<[1], [0], [0], [1], [0, 0, 1, 1], [], []>} : vector<256x32xf32>, vector<32x16xf32>, vector<256x16xf32> -> vector<256x16xf32>
    %c0_40 = arith.constant 0 : index
    %c0_41 = arith.constant 0 : index
    %48 = vector.load %arg9[%c0_40, %c0_41] : memref<1x16xf32, #tpu.memory_space<vmem>>, vector<1x16xf32>
    %49 = vector.broadcast %48 : vector<1x16xf32> to vector<256x16xf32>
    %50 = arith.addf %47, %49 : vector<256x16xf32>
    %cst_42 = arith.constant 0.000000e+00 : f32
    %51 = vector.broadcast %cst_42 : f32 to vector<256x16xf32>
    %52 = arith.maximumf %50, %51 : vector<256x16xf32>
    %cst_43 = arith.constant 0.000000e+00 : f32
    %53 = vector.broadcast %cst_43 : f32 to vector<128x128xf32>
    %54 = vector.extract_strided_slice %52 {offsets = [0, 0], sizes = [128, 16], strides = [1, 1]} : vector<256x16xf32> to vector<128x16xf32>
    %c0_44 = arith.constant 0 : index
    %c0_45 = arith.constant 0 : index
    %55 = vector.load %arg10[%c0_44, %c0_45] : memref<32x128xf32, #tpu.memory_space<vmem>>, vector<16x128xf32>
    %cst_46 = arith.constant dense<0.000000e+00> : vector<128x128xf32>
    %56 = tpu.matmul %54, %55, %cst_46 {dimension_numbers = #tpu.dot_dimension_numbers<[1], [0], [0], [1], [0, 0, 1, 1], [], []>} : vector<128x16xf32>, vector<16x128xf32>, vector<128x128xf32> -> vector<128x128xf32>
    %57 = arith.addf %53, %56 : vector<128x128xf32>
    %58 = vector.extract_strided_slice %52 {offsets = [128, 0], sizes = [128, 16], strides = [1, 1]} : vector<256x16xf32> to vector<128x16xf32>
    %c16 = arith.constant 16 : index
    %c0_47 = arith.constant 0 : index
    %59 = vector.load %arg10[%c16, %c0_47] : memref<32x128xf32, #tpu.memory_space<vmem>>, vector<16x128xf32>
    %cst_48 = arith.constant dense<0.000000e+00> : vector<128x128xf32>
    %60 = tpu.matmul %58, %59, %cst_48 {dimension_numbers = #tpu.dot_dimension_numbers<[1], [0], [0], [1], [0, 0, 1, 1], [], []>} : vector<128x16xf32>, vector<16x128xf32>, vector<128x128xf32> -> vector<128x128xf32>
    %61 = arith.addf %57, %60 : vector<128x128xf32>
    %c0_49 = arith.constant 0 : index
    %c0_50 = arith.constant 0 : index
    %62 = vector.load %arg11[%c0_49, %c0_50] : memref<1x128xf32, #tpu.memory_space<vmem>>, vector<1x128xf32>
    %63 = vector.broadcast %62 : vector<1x128xf32> to vector<128x128xf32>
    %64 = arith.addf %61, %63 : vector<128x128xf32>
    %c0_51 = arith.constant 0 : index
    %c0_52 = arith.constant 0 : index
    %65 = vector.load %arg12[%c0_51, %c0_52] : memref<128x128xf32, #tpu.memory_space<vmem>>, vector<128x128xf32>
    tpu.vector_store %arg12[%c0_51, %c0_52], %64 {strides = array<i32>} : memref<128x128xf32, #tpu.memory_space<vmem>>, vector<128x128xf32>,
    return
  }
  func.func @transform_0(%arg0: i32) -> (i32, i32, i32) {
    %c0_i32 = arith.constant 0 : i32
    %c0_i32_0 = arith.constant 0 : i32
    %c0_i32_1 = arith.constant 0 : i32
    return %c0_i32, %arg0, %c0_i32_0 : i32, i32, i32
  }
  func.func @transform_1(%arg0: i32) -> (i32, i32) {
    %c0_i32 = arith.constant 0 : i32
    %c0_i32_0 = arith.constant 0 : i32
    %c0_i32_1 = arith.constant 0 : i32
    return %c0_i32, %c0_i32_0 : i32, i32
  }
  func.func @transform_2(%arg0: i32) -> (i32, i32) {
    %c0_i32 = arith.constant 0 : i32
    %c0_i32_0 = arith.constant 0 : i32
    %c0_i32_1 = arith.constant 0 : i32
    return %c0_i32, %c0_i32_0 : i32, i32
  }
  func.func @transform_3(%arg0: i32) -> (i32, i32, i32) {
    %c0_i32 = arith.constant 0 : i32
    %c0_i32_0 = arith.constant 0 : i32
    %c0_i32_1 = arith.constant 0 : i32
    %c0_i32_2 = arith.constant 0 : i32
    return %c0_i32, %c0_i32_0, %c0_i32_1 : i32, i32, i32
  }
  func.func @transform_4(%arg0: i32) -> (i32, i32, i32) {
    %c0_i32 = arith.constant 0 : i32
    %c0_i32_0 = arith.constant 0 : i32
    %c0_i32_1 = arith.constant 0 : i32
    %c0_i32_2 = arith.constant 0 : i32
    return %c0_i32, %c0_i32_0, %c0_i32_1 : i32, i32, i32
  }
  func.func @transform_5(%arg0: i32) -> (i32, i32, i32) {
    %c0_i32 = arith.constant 0 : i32
    %c0_i32_0 = arith.constant 0 : i32
    %c0_i32_1 = arith.constant 0 : i32
    %c0_i32_2 = arith.constant 0 : i32
    return %c0_i32, %c0_i32_0, %c0_i32_1 : i32, i32, i32
  }
  func.func @transform_6(%arg0: i32) -> (i32, i32, i32) {
    %c0_i32 = arith.constant 0 : i32
    %c0_i32_0 = arith.constant 0 : i32
    %c0_i32_1 = arith.constant 0 : i32
    %c0_i32_2 = arith.constant 0 : i32
    return %c0_i32, %c0_i32_0, %c0_i32_1 : i32, i32, i32
  }
  func.func @transform_7(%arg0: i32) -> (i32, i32) {
    %c0_i32 = arith.constant 0 : i32
    %c0_i32_0 = arith.constant 0 : i32
    %c0_i32_1 = arith.constant 0 : i32
    return %c0_i32, %c0_i32_0 : i32, i32
  }
  func.func @transform_8(%arg0: i32) -> (i32, i32) {
    %c0_i32 = arith.constant 0 : i32
    %c0_i32_0 = arith.constant 0 : i32
    %c0_i32_1 = arith.constant 0 : i32
    return %c0_i32, %c0_i32_0 : i32, i32
  }
  func.func @transform_9(%arg0: i32) -> (i32, i32) {
    %c0_i32 = arith.constant 0 : i32
    %c0_i32_0 = arith.constant 0 : i32
    %c0_i32_1 = arith.constant 0 : i32
    return %c0_i32, %c0_i32_0 : i32, i32
  }
  func.func @transform_10(%arg0: i32) -> (i32, i32) {
    %c0_i32 = arith.constant 0 : i32
    %c0_i32_0 = arith.constant 0 : i32
    %c0_i32_1 = arith.constant 0 : i32
    return %c0_i32, %c0_i32_0 : i32, i32
  }
  func.func @transform_11(%arg0: i32) -> (i32, i32) {
    %c0_i32 = arith.constant 0 : i32
    %c0_i32_0 = arith.constant 0 : i32
    return %arg0, %c0_i32 : i32, i32
  }
}

</mosaic_0001>

<bundles_post_ra>
// kernel: tpu_custom_call.1
= control target key start
LH: loop header
LB: loop body
LE: loop exit
PB: predicated region body
PF: predicated region fallthrough
CT: control target
= control target key end

     0   :  { %s5782_s0 = inlined_call_operand.vmem [shape: f32[2,256,64], index: 0, kind: input, shape index: {}]   ;;  %s5783_s1 = inlined_call_operand.vmem [shape: f32[64,32], index: 1, kind: input, shape index: {}]   ;;  %s5784_s2 = inlined_call_operand.vmem [shape: f32[1,32], index: 2, kind: input, shape index: {}]   ;;  %s5785_s3 = inlined_call_operand.vmem [shape: f32[2,32,32], index: 3, kind: input, shape index: {}]   ;;  %s5786_s4 = inlined_call_operand.vmem [shape: f32[2,1,32], index: 4, kind: input, shape index: {}]   ;;  %s5787_s5 = inlined_call_operand.vmem [shape: f32[2,256,1], index: 5, kind: input, shape index: {}]   ;;  %s5788_s6 = inlined_call_operand.vmem [shape: f32[2,256,1], index: 6, kind: input, shape index: {}]   ;;  %s5789_s7 = inlined_call_operand.vmem [shape: f32[32,16], index: 7, kind: input, shape index: {}]   ;;  %s5790_s8 = inlined_call_operand.vmem [shape: f32[1,16], index: 8, kind: input, shape index: {}]   ;;  %s5791_s9 = inlined_call_operand.vmem [shape: f32[32,128], index: 9, kind: input, shape index: {}]   ;;  %s5792_s10 = inlined_call_operand.vmem [shape: f32[1,128], index: 10, kind: input, shape index: {}]   ;;  %s5793_s11 = inlined_call_operand.hbm [shape: f32[256,128], index: 11, kind: output, shape index: {}]  }
   0x1   :  { %5795 = sst [smem:[#allocation6_spill]] %s5782_s0 }
   0x2   :  { %16 = vsyncpa [#allocation4], 0 }
   0x3   :  { %18 = vsyncpa [#allocation4 + $0x1], 0  ;;  %s4431_s17 = smov 0   ;;  %s4433_s18 = smov 0  }
   0x4   :  { %s4435_s19 = smov 0   ;;  %s4437_s20 = smov 0  }
   0x5 LB: > { %s5794_s21 = sadd.s32 4294967295, %s4365_s20   ;;  %s3453_s22 = sadd.s32 4294967294, %s4365_s20   ;;  %s4365_s20 = sphi %s4437_s20, %s5804_s20   ;;  %s4361_s19 = sphi %s4435_s19, %s5803_s19   ;;  %s4357_s18 = sphi %s4433_s18, %s5802_s18   ;;  %s4353_s17 = sphi %s4431_s17, %s5801_s17  }
   0x6   : > { %s4454_s23 = sadd.s32 1, %s4365_s20   ;;  %s31_s24 = sadd.s32 1, %s4361_s19 }
   0x7   : > { %s28_s25 = ssub.s32 %s4365_s20, %s4454_s23  ;;  %p38_p0 = scmp.ne.s32.totalorder %s4361_s19, %s4357_s18 }
   0x8   : > { %p29_p1 = scmp.eq.s32.totalorder %s28_s25, 0  ;;  %p39_p2 = scmp.eq.s32.totalorder %s4365_s20, 0 }
   0x9   : > { %p278_p3 = scmp.eq.s32.totalorder %s5794_s21, 1  ;;  %p283_p4 = scmp.ne.s32.totalorder %s4357_s18, %s4353_s17 }
   0xa   : > { %s4467_s26 = scalar_select %p29_p1, %s4361_s19, %s31_s24  }
   0xb   : > { %p40_p5 = por %p39_p2, %p38_p0  ;;  %p4469_p6 = por %p278_p3, %p38_p0 }
   0xc   : > { %p284_p7 = scmp.eq.s32.totalorder %s3453_s22, 1  ;;  %p3455_p9 = scmp.ge.s32.totalorder %s4365_s20, 2 }
   0xe   : > { %p4473_p8 = por %p284_p7, %p283_p4  ;;  %330 = sbr.rel (%p3455_p9) target bundleno = 47 (0x2f), region = 56 }
  0x15   : > { %333 = sbr.rel (!%p40_p5) target bundleno = 47 (0x2f), region = 60  ;;  %s335_s29 = sand.u32 (%p40_p5), 1, %s4361_s19  }
  0x16   : > { %s3717_s30 = sshll.u32 (%p40_p5), %s4365_s20, 7  ;;  %s3456_s12 = sshll.u32 (%p40_p5), %s335_s29, 8 }
  0x17   : > { %s5798_s0 = sld [smem:[#allocation6_spill]] (%p40_p5)  ;;  %s4490_s16 = scalar_lea.vmem (%p40_p5), [#allocation2], %s3456_s12 }
  0x1d   : > { %s4485_s15 = scalar_lea.vmem %s5798_s0, %s3717_s30 }
  0x1e   : > { %v430_v0 = vld [vmem:[%s4485_s15] sm:$0xff]  ;;  %v432_v1 = vld [vmem:[%s4485_s15 + $0x8] sm:$0xff]  ;;  %v434_v2 = vld [vmem:[%s4485_s15 + $0x10] sm:$0xff] }
  0x1f   : > { %431 = vst [vmem:[%s4490_s16] sm:$0xff] %v430_v0  ;;  %433 = vst [vmem:[%s4490_s16 + $0x8] sm:$0xff] %v432_v1  ;;  %v436_v3 = vld [vmem:[%s4485_s15 + $0x18] sm:$0xff]  ;;  %v438_v4 = vld [vmem:[%s4485_s15 + $0x20] sm:$0xff] }
  0x20   : > { %435 = vst [vmem:[%s4490_s16 + $0x10] sm:$0xff] %v434_v2  ;;  %v440_v5 = vld [vmem:[%s4485_s15 + $0x28] sm:$0xff]  ;;  %437 = vst [vmem:[%s4490_s16 + $0x18] sm:$0xff] %v436_v3  ;;  %v442_v6 = vld [vmem:[%s4485_s15 + $0x30] sm:$0xff] }
  0x21   : > { %439 = vst [vmem:[%s4490_s16 + $0x20] sm:$0xff] %v438_v4  ;;  %441 = vst [vmem:[%s4490_s16 + $0x28] sm:$0xff] %v440_v5  ;;  %v444_v7 = vld [vmem:[%s4485_s15 + $0x38] sm:$0xff]  ;;  %v446_v8 = vld [vmem:[%s4485_s15 + $0x40] sm:$0xff] }
  0x22   : > { %443 = vst [vmem:[%s4490_s16 + $0x30] sm:$0xff] %v442_v6  ;;  %445 = vst [vmem:[%s4490_s16 + $0x38] sm:$0xff] %v444_v7  ;;  %v448_v9 = vld [vmem:[%s4485_s15 + $0x48] sm:$0xff]  ;;  %v450_v10 = vld [vmem:[%s4485_s15 + $0x50] sm:$0xff] }
  0x23   : > { %447 = vst [vmem:[%s4490_s16 + $0x40] sm:$0xff] %v446_v8  ;;  %v452_v11 = vld [vmem:[%s4485_s15 + $0x58] sm:$0xff]  ;;  %449 = vst [vmem:[%s4490_s16 + $0x48] sm:$0xff] %v448_v9  ;;  %v454_v12 = vld [vmem:[%s4485_s15 + $0x60] sm:$0xff] }
  0x24   : > { %451 = vst [vmem:[%s4490_s16 + $0x50] sm:$0xff] %v450_v10  ;;  %453 = vst [vmem:[%s4490_s16 + $0x58] sm:$0xff] %v452_v11  ;;  %v456_v13 = vld [vmem:[%s4485_s15 + $0x68] sm:$0xff]  ;;  %v458_v14 = vld [vmem:[%s4485_s15 + $0x70] sm:$0xff] }
  0x25   : > { %455 = vst [vmem:[%s4490_s16 + $0x60] sm:$0xff] %v454_v12  ;;  %457 = vst [vmem:[%s4490_s16 + $0x68] sm:$0xff] %v456_v13  ;;  %v460_v15 = vld [vmem:[%s4485_s15 + $0x78] sm:$0xff]  ;;  %v462_v16 = vld [vmem:[%s4485_s15 + $0x100] sm:$0xff] }
  0x26   : > { %459 = vst [vmem:[%s4490_s16 + $0x70] sm:$0xff] %v458_v14  ;;  %v464_v17 = vld [vmem:[%s4485_s15 + $0x108] sm:$0xff]  ;;  %461 = vst [vmem:[%s4490_s16 + $0x78] sm:$0xff] %v460_v15  ;;  %v466_v18 = vld [vmem:[%s4485_s15 + $0x110] sm:$0xff] }
  0x27   : > { %463 = vst [vmem:[%s4490_s16 + $0x80] sm:$0xff] %v462_v16  ;;  %465 = vst [vmem:[%s4490_s16 + $0x88] sm:$0xff] %v464_v17  ;;  %v468_v19 = vld [vmem:[%s4485_s15 + $0x118] sm:$0xff]  ;;  %v470_v20 = vld [vmem:[%s4485_s15 + $0x120] sm:$0xff] }
  0x28   : > { %467 = vst [vmem:[%s4490_s16 + $0x90] sm:$0xff] %v466_v18  ;;  %469 = vst [vmem:[%s4490_s16 + $0x98] sm:$0xff] %v468_v19  ;;  %v472_v21 = vld [vmem:[%s4485_s15 + $0x128] sm:$0xff]  ;;  %v474_v22 = vld [vmem:[%s4485_s15 + $0x130] sm:$0xff] }
  0x29   : > { %471 = vst [vmem:[%s4490_s16 + $0xa0] sm:$0xff] %v470_v20  ;;  %v476_v23 = vld [vmem:[%s4485_s15 + $0x138] sm:$0xff]  ;;  %473 = vst [vmem:[%s4490_s16 + $0xa8] sm:$0xff] %v472_v21  ;;  %v478_v24 = vld [vmem:[%s4485_s15 + $0x140] sm:$0xff] }
  0x2a   : > { %475 = vst [vmem:[%s4490_s16 + $0xb0] sm:$0xff] %v474_v22  ;;  %477 = vst [vmem:[%s4490_s16 + $0xb8] sm:$0xff] %v476_v23  ;;  %v480_v25 = vld [vmem:[%s4485_s15 + $0x148] sm:$0xff]  ;;  %v482_v26 = vld [vmem:[%s4485_s15 + $0x150] sm:$0xff] }
  0x2b   : > { %479 = vst [vmem:[%s4490_s16 + $0xc0] sm:$0xff] %v478_v24  ;;  %481 = vst [vmem:[%s4490_s16 + $0xc8] sm:$0xff] %v480_v25  ;;  %v484_v27 = vld [vmem:[%s4485_s15 + $0x158] sm:$0xff]  ;;  %v486_v28 = vld [vmem:[%s4485_s15 + $0x160] sm:$0xff] }
  0x2c   : > { %483 = vst [vmem:[%s4490_s16 + $0xd0] sm:$0xff] %v482_v26  ;;  %v488_v29 = vld [vmem:[%s4485_s15 + $0x168] sm:$0xff]  ;;  %485 = vst [vmem:[%s4490_s16 + $0xd8] sm:$0xff] %v484_v27  ;;  %v490_v30 = vld [vmem:[%s4485_s15 + $0x170] sm:$0xff] }
  0x2d   : > { %487 = vst [vmem:[%s4490_s16 + $0xe0] sm:$0xff] %v486_v28  ;;  %489 = vst [vmem:[%s4490_s16 + $0xe8] sm:$0xff] %v488_v29  ;;  %v492_v31 = vld [vmem:[%s4485_s15 + $0x178] sm:$0xff] }
  0x2e   : > { %491 = vst [vmem:[%s4490_s16 + $0xf0] sm:$0xff] %v490_v30  ;;  %493 = vst [vmem:[%s4490_s16 + $0xf8] sm:$0xff] %v492_v31 }
  0x2f PF: > { %p3459_p10 = scmp.ge.s32.totalorder %s4365_s20, 1  ;;  %p498_p11 = scmp.lt.s32.totalorder %s4365_s20, 3 }
  0x31   : > { %p499_p12 = pnand %p3459_p10, %p498_p11 }
  0x32   : > { %v579_v32 = vld [vmem:[%s5783_s1] sm:$0xff] (!%p499_p12)  ;;  %v580_v33 = vld [vmem:[%s5783_s1 + $0x8] sm:$0xff] (!%p499_p12)  ;;  %v581_v34 = vld [vmem:[%s5783_s1 + $0x10] sm:$0xff] (!%p499_p12)  ;;  %s4565_s13 = sand.u32 (!%p499_p12), 1, %s4357_s18   ;;  %v4367_v37 = vmov (!%p499_p12), 0   ;;  %vm594_vm0 = vcmask (!%p499_p12), 523264  }
  0x33   : > { %502 = sbr.rel (%p499_p12) target bundleno = 1272 (0x4f8), region = 98  ;;  %v4191_v35 = vpack.c.bf16 (!%p499_p12), %v580_v33, %v579_v32  ;;  %v582_v36 = vld [vmem:[%s5783_s1 + $0x18] sm:$0xff] (!%p499_p12)  ;;  %4301 = vset.pattern.permute.xlu0 (!%p499_p12), %v4367_v37  ;;  %4302 = vset.pattern.permute.xlu1 (!%p499_p12), %v4367_v37  ;;  %v1281_v38 = vld [vmem:[%s5787_s5] sm:$0xff] (!%p499_p12)  ;;  %s3460_s29 = sshll.u32 (!%p499_p12), %s4565_s13, 8  ;;  %v584_v42 = vld [vmem:[%s5783_s1 + $0x28] sm:$0xff] (!%p499_p12)  ;;  %vm959_vm1 = vcmask (!%p499_p12), 261120  }
  0x34   : > { %v1505_v39 = vld [vmem:[%s5788_s6] sm:$0xff] (!%p499_p12)  ;;  %v4195_v40 = vpack.c.bf16 (!%p499_p12), %v582_v36, %v581_v34  ;;  %1315 = vperm.xlu0 (!%p499_p12), %4301, %v1281_v38   ;;  %v1282_v43 = vld [vmem:[%s5787_s5 + $0x8] sm:$0xff] (!%p499_p12)  ;;  %s4589_s21 = scalar_lea.vmem (!%p499_p12), [#allocation2], %s3460_s29  ;;  %v585_v47 = vld [vmem:[%s5783_s1 + $0x30] sm:$0xff] (!%p499_p12)  ;;  %vm2945_vm2 = vcmask (!%p499_p12), 130048   ;;  %s3461_s12 = sshll.u32 (!%p499_p12), %s4565_s13, 7 }
  0x35   : > { %1539 = vperm.xlu1 (!%p499_p12), %4302, %v1505_v39   ;;  %v583_v41 = vld [vmem:[%s5783_s1 + $0x20] sm:$0xff] (!%p499_p12)  ;;  %4192 = vmatprep.subr.bf16.mxu0 (!%p499_p12), %v4191_v35  ;;  %v1506_v44 = vld [vmem:[%s5788_s6 + $0x8] sm:$0xff] (!%p499_p12)  ;;  %v586_v48 = vld [vmem:[%s5783_s1 + $0x38] sm:$0xff] (!%p499_p12)  ;;  %s5712_s16 = scalar_lea.vmem (!%p499_p12), [#allocation3], %s3461_s12  ;;  %s5799_s22 = sadd.s32 (!%p499_p12), 4294967295, %s4365_s20  }
  0x36   : > { %4194 = vmatpush3.bf16.msra.mxu0 (!%p499_p12), %v4191_v35  ;;  %v546_v45 = vld [vmem:[%s4589_s21] sm:$0xff] (!%p499_p12)  ;;  %v4199_v46 = vpack.c.bf16 (!%p499_p12), %v584_v42, %v583_v41  ;;  %v1283_v49 = vld [vmem:[%s5787_s5 + $0x10] sm:$0xff] (!%p499_p12)  ;;  %v1284_v50 = vld [vmem:[%s5787_s5 + $0x18] sm:$0xff] (!%p499_p12)  ;;  %v4203_v51 = vpack.c.bf16 (!%p499_p12), %v586_v48, %v585_v47  ;;  %s3718_s29 = sshll.u32 (!%p499_p12), %s5799_s22, 11  ;;  %s3385_s24 = sshll.u32 (!%p499_p12), %s5712_s16, 4  ;;  %s5736_s24 = int_to_ptr.vmem [resolvable:$true] %s3385_s24 }
  0x37   : > { %4196 = vmatprep.subr.bf16.mxu0 (!%p499_p12), %v4195_v40  ;;  %3919 = vmatprep.mubr.msk.f32.mxu0 (!%p499_p12), %vm594_vm0, %v546_v45  ;;  %v1507_v52 = vld [vmem:[%s5788_s6 + $0x10] sm:$0xff] (!%p499_p12)  ;;  %v1508_v53 = vld [vmem:[%s5788_s6 + $0x18] sm:$0xff] (!%p499_p12)  ;;  %v1285_v54 = vld [vmem:[%s5787_s5 + $0x20] sm:$0xff] (!%p499_p12)  ;;  %s4303_s14 = scalar_lea.vmem (!%p499_p12), %s5736_s24, 2048  ;;  %s4368_s15 = smov (!%p499_p12), [#allocation3]  }
  0x38   : > { %1320 = vperm.xlu0 (!%p499_p12), %4301, %v1282_v43   ;;  %v1286_v55 = vld [vmem:[%s5787_s5 + $0x28] sm:$0xff] (!%p499_p12)  ;;  %v548_v57 = vld [vmem:[%s4589_s21 + $0x10] sm:$0xff] (!%p499_p12)  ;;  %v1509_v58 = vld [vmem:[%s5788_s6 + $0x20] sm:$0xff] (!%p499_p12)  ;;  %p4304_p13 = scmp.ne.s32.totalorder (!%p499_p12), %s5736_s24, %s4303_s14  ;;  %s4307_s22 = sshll.u32 (!%p499_p12), %s4368_s15, 4  ;;  %s4308_s22 = int_to_ptr.vmem [resolvable:$false] %s4307_s22 }
  0x39   : > { %1544 = vperm.xlu1 (!%p499_p12), %4302, %v1506_v44   ;;  %v547_v56 = vld [vmem:[%s4589_s21 + $0x8] sm:$0xff] (!%p499_p12)  ;;  %v549_v60 = vld [vmem:[%s4589_s21 + $0x18] sm:$0xff] (!%p499_p12)  ;;  %v550_v61 = vld [vmem:[%s4589_s21 + $0x20] sm:$0xff] (!%p499_p12)  ;;  %s4309_s25 = scalar_lea.vmem (!%p499_p12), %s4308_s22, 4096  ;;  %p4310_p2 = scmp.lt.s32.totalorder (!%p499_p12), %s5736_s24, %s4308_s22 }
  0x3a   : > { %4198 = vmatpush3.bf16.msra.mxu0 %v4195_v40  ;;  %v1510_v59 = vld [vmem:[%s5788_s6 + $0x28] sm:$0xff]  ;;  %v1287_v62 = vld [vmem:[%s5787_s5 + $0x30] sm:$0xff]  ;;  %v1288_v63 = vld [vmem:[%s5787_s5 + $0x38] sm:$0xff]  ;;  %p4305_p0 = pnand %p4304_p13, %p4469_p6  ;;  %p4311_p3 = scmp.lt.s32.totalorder %s4309_s25, %s4303_s14 }
  0x3b   : > { %4200 = vmatprep.subr.bf16.mxu0 %v4199_v46  ;;  %v551_v0 = vld [vmem:[%s4589_s21 + $0x28] sm:$0xff]  ;;  %v552_v1 = vld [vmem:[%s4589_s21 + $0x30] sm:$0xff]  ;;  %v1512_v3 = vld [vmem:[%s5788_s6 + $0x38] sm:$0xff] }
  0x3c   : > { %1325 = vperm.xlu0 %4301, %v1283_v49   ;;  %v1511_v2 = vld [vmem:[%s5788_s6 + $0x30] sm:$0xff]  ;;  %v553_v4 = vld [vmem:[%s4589_s21 + $0x38] sm:$0xff]  ;;  %v554_v5 = vld [vmem:[%s4589_s21 + $0x40] sm:$0xff]  ;;  %p4306_p1 = pneg %p4305_p0  ;;  %p4312_p4 = por %p4311_p3, %p4310_p2 }
  0x3d   : > { %1330 = vperm.xlu1 %4302, %v1284_v50   ;;  %v1289_v6 = vld [vmem:[%s5787_s5 + $0x40] sm:$0xff]  ;;  %v1290_v7 = vld [vmem:[%s5787_s5 + $0x48] sm:$0xff]  ;;  %v556_v9 = vld [vmem:[%s4589_s21 + $0x50] sm:$0xff] }
  0x3e   : > { %4202 = vmatpush3.bf16.msra.mxu0 %v4199_v46  ;;  %v555_v8 = vld [vmem:[%s4589_s21 + $0x48] sm:$0xff]  ;;  %v1513_v10 = vld [vmem:[%s5788_s6 + $0x40] sm:$0xff]  ;;  %v557_v12 = vld [vmem:[%s4589_s21 + $0x58] sm:$0xff]  ;;  %p4313_p5 = pnand %p4312_p4, %p4306_p1 }
  0x3f   : > { %4204 = vmatprep.subr.bf16.mxu0 %v4203_v51  ;;  %v1514_v11 = vld [vmem:[%s5788_s6 + $0x48] sm:$0xff]  ;;  %v558_v13 = vld [vmem:[%s4589_s21 + $0x60] sm:$0xff]  ;;  %v1291_v14 = vld [vmem:[%s5787_s5 + $0x50] sm:$0xff] }
  0x40   : > { %1549 = vperm.xlu0 %4301, %v1507_v52   ;;  %v1292_v15 = vld [vmem:[%s5787_s5 + $0x58] sm:$0xff]  ;;  %v559_v16 = vld [vmem:[%s4589_s21 + $0x68] sm:$0xff]  ;;  %v948_v17 = vld [vmem:[%s5785_s3] sm:$0xff] }
  0x41   : > { %1554 = vperm.xlu1 %4302, %v1508_v53   ;;  %v560_v18 = vld [vmem:[%s4589_s21 + $0x70] sm:$0xff]  ;;  %v949_v19 = vld [vmem:[%s5785_s3 + $0x8] sm:$0xff]  ;;  %v1516_v22 = vld [vmem:[%s5788_s6 + $0x58] sm:$0xff] }
  0x42   : > { %4206 = vmatpush3.bf16.msra.mxu0 %v4203_v51  ;;  %v4207_v20 = vpack.c.bf16 %v949_v19, %v948_v17  ;;  %v1515_v21 = vld [vmem:[%s5788_s6 + $0x50] sm:$0xff]  ;;  %v561_v23 = vld [vmem:[%s4589_s21 + $0x78] sm:$0xff]  ;;  %v3462_v24 = vld [vmem:[%s4589_s21 + $0x80] sm:$0xff] }
  0x43   : > { %v1293_v25 = vld [vmem:[%s5787_s5 + $0x60] sm:$0xff]  ;;  %v1294_v26 = vld [vmem:[%s5787_s5 + $0x68] sm:$0xff]  ;;  %v3464_v28 = vld [vmem:[%s4589_s21 + $0x90] sm:$0xff] }
  0x44   : > { %1335 = vperm.xlu0 %4301, %v1285_v54   ;;  %4208 = vmatprep.subr.bf16.mxu0 %v4207_v20  ;;  %v3463_v27 = vld [vmem:[%s4589_s21 + $0x88] sm:$0xff]  ;;  %v1517_v29 = vld [vmem:[%s5788_s6 + $0x60] sm:$0xff]  ;;  %v3465_v31 = vld [vmem:[%s4589_s21 + $0x98] sm:$0xff] }
  0x45   : > { %1340 = vperm.xlu1 %4302, %v1286_v55   ;;  %3920 = vmatmul.mubr.msk.f32.vlgmr.msra.gmra.mrb[0].mxu0 %vm594_vm0, %v547_v56  ;;  %v1518_v30 = vld [vmem:[%s5788_s6 + $0x68] sm:$0xff]  ;;  %v3466_v32 = vld [vmem:[%s4589_s21 + $0xa0] sm:$0xff]  ;;  %v1295_v33 = vld [vmem:[%s5787_s5 + $0x70] sm:$0xff] }
  0x46   : > { %3922 = vmatprep.mubr.msk.f32.mxu0 %vm594_vm0, %v548_v57  ;;  %4210 = vmatpush3.bf16.msra.mxu0 %v4207_v20  ;;  %v1296_v34 = vld [vmem:[%s5787_s5 + $0x78] sm:$0xff]  ;;  %v3467_v35 = vld [vmem:[%s4589_s21 + $0xa8] sm:$0xff]  ;;  %v3468_v36 = vld [vmem:[%s4589_s21 + $0xb0] sm:$0xff] }
  0x47   : > { %4239 = vmatprep.subr.bf16.mxu1 %v4207_v20  ;;  %v1519_v37 = vld [vmem:[%s5788_s6 + $0x70] sm:$0xff]  ;;  %v1520_v38 = vld [vmem:[%s5788_s6 + $0x78] sm:$0xff]  ;;  %v3470_v40 = vld [vmem:[%s4589_s21 + $0xc0] sm:$0xff] }
  0x48   : > { %1559 = vperm.xlu0 %4301, %v1509_v58   ;;  %4241 = vmatpush3.bf16.msra.mxu1 %v4207_v20  ;;  %v3469_v39 = vld [vmem:[%s4589_s21 + $0xb8] sm:$0xff]  ;;  %v1297_v41 = vld [vmem:[%s5787_s5 + $0x80] sm:$0xff]  ;;  %v1298_v42 = vld [vmem:[%s5787_s5 + $0x88] sm:$0xff] }
  0x49   : > { %1564 = vperm.xlu1 %4302, %v1510_v59   ;;  %3923 = vmatmul.mubr.msk.f32.gmra.mrb[2].mxu0 %vm594_vm0, %v549_v60  ;;  %v3471_v43 = vld [vmem:[%s4589_s21 + $0xc8] sm:$0xff]  ;;  %v3472_v44 = vld [vmem:[%s4589_s21 + $0xd0] sm:$0xff]  ;;  %v951_v46 = vld [vmem:[%s5785_s3 + $0x18] sm:$0xff] }
  0x4a   : > { %3925 = vmatprep.mubr.msk.f32.mxu0 %vm594_vm0, %v550_v61  ;;  %v950_v45 = vld [vmem:[%s5785_s3 + $0x10] sm:$0xff]  ;;  %v1521_v47 = vld [vmem:[%s5788_s6 + $0x80] sm:$0xff]  ;;  %v1522_v48 = vld [vmem:[%s5788_s6 + $0x88] sm:$0xff] }
  0x4b   : > { %v4211_v49 = vpack.c.bf16 %v951_v46, %v950_v45  ;;  %v3473_v50 = vld [vmem:[%s4589_s21 + $0xd8] sm:$0xff]  ;;  %v3474_v51 = vld [vmem:[%s4589_s21 + $0xe0] sm:$0xff]  ;;  %v1299_v52 = vld [vmem:[%s5787_s5 + $0x90] sm:$0xff] }
  0x4c   : > { %1345 = vperm.xlu0 %4301, %v1287_v62   ;;  %v1300_v53 = vld [vmem:[%s5787_s5 + $0x98] sm:$0xff]  ;;  %v3475_v54 = vld [vmem:[%s4589_s21 + $0xe8] sm:$0xff]  ;;  %v3476_v55 = vld [vmem:[%s4589_s21 + $0xf0] sm:$0xff] }
  0x4d   : > { %1350 = vperm.xlu1 %4302, %v1288_v63   ;;  %3926 = vmatmul.mubr.msk.f32.gmra.mrb[4].mxu0 %vm594_vm0, %v551_v0  ;;  %v1523_v56 = vld [vmem:[%s5788_s6 + $0x90] sm:$0xff]  ;;  %v1524_v57 = vld [vmem:[%s5788_s6 + $0x98] sm:$0xff]  ;;  %v1301_v59 = vld [vmem:[%s5787_s5 + $0xa0] sm:$0xff] }
  0x4e   : > { %3928 = vmatprep.mubr.msk.f32.mxu0 %vm594_vm0, %v552_v1  ;;  %4212 = vmatprep.subr.bf16.mxu0 %v4211_v49  ;;  %v3477_v58 = vld [vmem:[%s4589_s21 + $0xf8] sm:$0xff]  ;;  %v1302_v60 = vld [vmem:[%s5787_s5 + $0xa8] sm:$0xff]  ;;  %v1525_v61 = vld [vmem:[%s5788_s6 + $0xa0] sm:$0xff]  ;;  %s5734_s21 = scalar_lea.hbm %s5793_s11, %s3718_s29 }
  0x4f   : > { %4240 = vmatprep.subr.bf16.mxu1 %v4211_v49  ;;  %4214 = vmatpush3.bf16.msra.mxu0 %v4211_v49  ;;  %v1526_v62 = vld [vmem:[%s5788_s6 + $0xa8] sm:$0xff]  ;;  %v1303_v63 = vld [vmem:[%s5787_s5 + $0xb0] sm:$0xff]  ;;  %v1304_v0 = vld [vmem:[%s5787_s5 + $0xb8] sm:$0xff] }
  0x50   : > { %1569 = vperm.xlu0 %4301, %v1511_v2   ;;  %4242 = vmatpush3.bf16.msra.mxu1 %v4211_v49  ;;  %v1527_v1 = vld [vmem:[%s5788_s6 + $0xb0] sm:$0xff]  ;;  %v1528_v2 = vld [vmem:[%s5788_s6 + $0xb8] sm:$0xff]  ;;  %v3582_v19 = vld [vmem:[%s5787_s5 + $0x100] sm:$0xff] }
  0x51   : > { %1574 = vperm.xlu1 %4302, %v1512_v3   ;;  %3929 = vmatmul.mubr.msk.f32.gmra.mrb[6].mxu0 %vm594_vm0, %v553_v4  ;;  %v1305_v3 = vld [vmem:[%s5787_s5 + $0xc0] sm:$0xff]  ;;  %v1306_v4 = vld [vmem:[%s5787_s5 + $0xc8] sm:$0xff]  ;;  %v1535_v17 = vld [vmem:[%s5788_s6 + $0xf0] sm:$0xff] }
  0x52   : > { %3931 = vmatprep.mubr.msk.f32.mxu0 %vm594_vm0, %v554_v5  ;;  %v1529_v5 = vld [vmem:[%s5788_s6 + $0xc0] sm:$0xff]  ;;  %v3583_v20 = vld [vmem:[%s5787_s5 + $0x108] sm:$0xff] }
  0x53   : > { %v3594_v46 = vld [vmem:[%s5787_s5 + $0x160] sm:$0xff] }
  0x54   : > { %1355 = vperm.xlu0 %4301, %v1289_v6   ;;  %v1530_v6 = vld [vmem:[%s5788_s6 + $0xc8] sm:$0xff]  ;;  %v3626_v49 = vld [vmem:[%s5788_s6 + $0x160] sm:$0xff] }
  0x55   : > { %1360 = vperm.xlu1 %4302, %v1290_v7   ;;  %3932 = vmatmul.mubr.msk.f32.gmra.mrb[8].mxu0 %vm594_vm0, %v555_v8  ;;  %v1307_v7 = vld [vmem:[%s5787_s5 + $0xd0] sm:$0xff]  ;;  %v1308_v8 = vld [vmem:[%s5787_s5 + $0xd8] sm:$0xff] }
  0x56   : > { %3934 = vmatprep.mubr.msk.f32.mxu0 %vm594_vm0, %v556_v9  ;;  %v1531_v9 = vld [vmem:[%s5788_s6 + $0xd0] sm:$0xff] }
  0x58   : > { %1579 = vperm.xlu0 %4301, %v1513_v10   ;;  %v1532_v10 = vld [vmem:[%s5788_s6 + $0xd8] sm:$0xff] }
  0x59   : > { %1584 = vperm.xlu1 %4302, %v1514_v11   ;;  %3935 = vmatmul.mubr.msk.f32.gmra.mrb[10].mxu0 %vm594_vm0, %v557_v12  ;;  %v1309_v11 = vld [vmem:[%s5787_s5 + $0xe0] sm:$0xff]  ;;  %v1310_v12 = vld [vmem:[%s5787_s5 + $0xe8] sm:$0xff] }
  0x5a   : > { %3937 = vmatprep.mubr.msk.f32.mxu0 %vm594_vm0, %v558_v13  ;;  %v1533_v13 = vld [vmem:[%s5788_s6 + $0xe0] sm:$0xff] }
  0x5c   : > { %1365 = vperm.xlu0 %4301, %v1291_v14   ;;  %v1534_v14 = vld [vmem:[%s5788_s6 + $0xe8] sm:$0xff] }
  0x5d   : > { %1370 = vperm.xlu1 %4302, %v1292_v15   ;;  %3938 = vmatmul.mubr.msk.f32.gmra.mrb[12].mxu0 %vm594_vm0, %v559_v16  ;;  %v1311_v15 = vld [vmem:[%s5787_s5 + $0xf0] sm:$0xff]  ;;  %v1312_v16 = vld [vmem:[%s5787_s5 + $0xf8] sm:$0xff] }
  0x5e   : > { %3940 = vmatprep.mubr.msk.f32.mxu0 %vm594_vm0, %v560_v18  ;;  %v1536_v18 = vld [vmem:[%s5788_s6 + $0xf8] sm:$0xff] }
  0x60   : > { %1589 = vperm.xlu0 %4301, %v1515_v21   ;;  %v3614_v21 = vld [vmem:[%s5788_s6 + $0x100] sm:$0xff] }
  0x61   : > { %1594 = vperm.xlu1 %4302, %v1516_v22   ;;  %3941 = vmatmul.mubr.msk.f32.gmra.mrb[14].mxu0 %vm594_vm0, %v561_v23  ;;  %v3615_v22 = vld [vmem:[%s5788_s6 + $0x108] sm:$0xff]  ;;  %v3584_v23 = vld [vmem:[%s5787_s5 + $0x110] sm:$0xff] }
  0x62   : > { %3943 = vmatprep.mubr.msk.f32.mxu0 %vm594_vm0, %v3462_v24  ;;  %v3585_v24 = vld [vmem:[%s5787_s5 + $0x118] sm:$0xff] }
  0x64   : > { %1375 = vperm.xlu0 %4301, %v1293_v25   ;;  %v3616_v25 = vld [vmem:[%s5788_s6 + $0x110] sm:$0xff] }
  0x65   : > { %1380 = vperm.xlu1 %4302, %v1294_v26   ;;  %3944 = vmatmul.mubr.msk.f32.gmra.mrb[16].mxu0 %vm594_vm0, %v3463_v27  ;;  %v3617_v26 = vld [vmem:[%s5788_s6 + $0x118] sm:$0xff]  ;;  %v3586_v27 = vld [vmem:[%s5787_s5 + $0x120] sm:$0xff] }
  0x66   : > { %3946 = vmatprep.mubr.msk.f32.mxu0 %vm594_vm0, %v3464_v28  ;;  %v3587_v28 = vld [vmem:[%s5787_s5 + $0x128] sm:$0xff] }
  0x68   : > { %1599 = vperm.xlu0 %4301, %v1517_v29   ;;  %v3618_v29 = vld [vmem:[%s5788_s6 + $0x120] sm:$0xff] }
  0x69   : > { %1604 = vperm.xlu1 %4302, %v1518_v30   ;;  %3947 = vmatmul.mubr.msk.f32.gmra.mrb[18].mxu0 %vm594_vm0, %v3465_v31  ;;  %v3619_v30 = vld [vmem:[%s5788_s6 + $0x128] sm:$0xff]  ;;  %v3588_v31 = vld [vmem:[%s5787_s5 + $0x130] sm:$0xff] }
  0x6a   : > { %3949 = vmatprep.mubr.msk.f32.mxu0 %vm594_vm0, %v3466_v32  ;;  %v3589_v32 = vld [vmem:[%s5787_s5 + $0x138] sm:$0xff] }
  0x6c   : > { %1385 = vperm.xlu0 %4301, %v1295_v33   ;;  %v3620_v33 = vld [vmem:[%s5788_s6 + $0x130] sm:$0xff] }
  0x6d   : > { %1390 = vperm.xlu1 %4302, %v1296_v34   ;;  %3950 = vmatmul.mubr.msk.f32.gmra.mrb[20].mxu0 %vm594_vm0, %v3467_v35  ;;  %v3621_v34 = vld [vmem:[%s5788_s6 + $0x138] sm:$0xff]  ;;  %v3590_v35 = vld [vmem:[%s5787_s5 + $0x140] sm:$0xff] }
  0x6e   : > { %3952 = vmatprep.mubr.msk.f32.mxu0 %vm594_vm0, %v3468_v36  ;;  %v3591_v36 = vld [vmem:[%s5787_s5 + $0x148] sm:$0xff] }
  0x70   : > { %1609 = vperm.xlu0 %4301, %v1519_v37   ;;  %v3622_v37 = vld [vmem:[%s5788_s6 + $0x140] sm:$0xff] }
  0x71   : > { %1614 = vperm.xlu1 %4302, %v1520_v38   ;;  %3953 = vmatmul.mubr.msk.f32.gmra.mrb[22].mxu0 %vm594_vm0, %v3469_v39  ;;  %v3623_v38 = vld [vmem:[%s5788_s6 + $0x148] sm:$0xff]  ;;  %v3592_v39 = vld [vmem:[%s5787_s5 + $0x150] sm:$0xff] }
  0x72   : > { %3955 = vmatprep.mubr.msk.f32.mxu0 %vm594_vm0, %v3470_v40  ;;  %v3593_v40 = vld [vmem:[%s5787_s5 + $0x158] sm:$0xff] }
  0x74   : > { %1395 = vperm.xlu0 %4301, %v1297_v41  }
  0x75   : > { %1400 = vperm.xlu1 %4302, %v1298_v42   ;;  %3956 = vmatmul.mubr.msk.f32.gmra.mrb[24].mxu0 %vm594_vm0, %v3471_v43  ;;  %v3624_v43 = vld [vmem:[%s5788_s6 + $0x150] sm:$0xff] }
  0x76   : > { %3958 = vmatprep.mubr.msk.f32.mxu0 %vm594_vm0, %v3472_v44  ;;  %v3625_v44 = vld [vmem:[%s5788_s6 + $0x158] sm:$0xff] }
  0x78   : > { %1619 = vperm.xlu0 %4301, %v1521_v47   ;;  %v3595_v47 = vld [vmem:[%s5787_s5 + $0x168] sm:$0xff] }
  0x79   : > { %1624 = vperm.xlu1 %4302, %v1522_v48   ;;  %3959 = vmatmul.mubr.msk.f32.gmra.mrb[26].mxu0 %vm594_vm0, %v3473_v50  ;;  %v3627_v50 = vld [vmem:[%s5788_s6 + $0x168] sm:$0xff] }
  0x7a   : > { %3961 = vmatprep.mubr.msk.f32.mxu0 %vm594_vm0, %v3474_v51 }
  0x7c   : > { %1405 = vperm.xlu0 %4301, %v1299_v52  }
  0x7d   : > { %1410 = vperm.xlu1 %4302, %v1300_v53   ;;  %3962 = vmatmul.mubr.msk.f32.gmra.mrb[28].mxu0 %vm594_vm0, %v3475_v54  ;;  %v3596_v53 = vld [vmem:[%s5787_s5 + $0x170] sm:$0xff]  ;;  %v3597_v54 = vld [vmem:[%s5787_s5 + $0x178] sm:$0xff] }
  0x7e   : > { %3964 = vmatprep.mubr.msk.f32.mxu0 %vm594_vm0, %v3476_v55 }
  0x80   : > { %1629 = vperm.xlu0 %4301, %v1523_v56   ;;  %v3628_v56 = vld [vmem:[%s5788_s6 + $0x170] sm:$0xff] }
  0x81   : > { %1634 = vperm.xlu1 %4302, %v1524_v57   ;;  %3965 = vmatmul.mubr.msk.f32.gmra.mrb[30].mxu0 %vm594_vm0, %v3477_v58  ;;  %v3629_v57 = vld [vmem:[%s5788_s6 + $0x178] sm:$0xff] }
  0x84   : > { %1415 = vperm.xlu0 %4301, %v1301_v59   ;;  %v3598_v59 = vld [vmem:[%s5787_s5 + $0x180] sm:$0xff] }
  0x85   : > { %1420 = vperm.xlu1 %4302, %v1302_v60   ;;  %v3599_v60 = vld [vmem:[%s5787_s5 + $0x188] sm:$0xff] }
  0x88   : > { %1639 = vperm.xlu0 %4301, %v1525_v61  }
  0x89   : > { %1644 = vperm.xlu1 %4302, %v1526_v62  }
  0x8c   : > { %1425 = vperm.xlu0 %4301, %v1303_v63   ;;  %v3630_v63 = vld [vmem:[%s5788_s6 + $0x180] sm:$0xff] }
  0x8d   : > { %1430 = vperm.xlu1 %4302, %v1304_v0   ;;  %v3631_v0 = vld [vmem:[%s5788_s6 + $0x188] sm:$0xff] }
  0x90   : > { %1649 = vperm.xlu0 %4301, %v1527_v1  }
  0x91   : > { %1654 = vperm.xlu1 %4302, %v1528_v2   ;;  %v3600_v2 = vld [vmem:[%s5787_s5 + $0x190] sm:$0xff] }
  0x94   : > { %1435 = vperm.xlu0 %4301, %v1305_v3   ;;  %v3601_v3 = vld [vmem:[%s5787_s5 + $0x198] sm:$0xff] }
  0x95   : > { %1440 = vperm.xlu1 %4302, %v1306_v4  }
  0x98   : > { %1659 = vperm.xlu0 %4301, %v1529_v5   ;;  %v3632_v5 = vld [vmem:[%s5788_s6 + $0x190] sm:$0xff] }
  0x99   : > { %1664 = vperm.xlu1 %4302, %v1530_v6   ;;  %v3633_v6 = vld [vmem:[%s5788_s6 + $0x198] sm:$0xff] }
  0x9c   : > { %1445 = vperm.xlu0 %4301, %v1307_v7  }
  0x9d   : > { %1450 = vperm.xlu1 %4302, %v1308_v8  }
  0xa0   : > { %1669 = vperm.xlu0 %4301, %v1531_v9   ;;  %v3602_v9 = vld [vmem:[%s5787_s5 + $0x1a0] sm:$0xff] }
  0xa1   : > { %1674 = vperm.xlu1 %4302, %v1532_v10   ;;  %v3603_v10 = vld [vmem:[%s5787_s5 + $0x1a8] sm:$0xff] }
  0xa4   : > { %1455 = vperm.xlu0 %4301, %v1309_v11  }
  0xa5   : > { %1460 = vperm.xlu1 %4302, %v1310_v12   ;;  %v3634_v12 = vld [vmem:[%s5788_s6 + $0x1a0] sm:$0xff] }
  0xa8   : > { %1679 = vperm.xlu0 %4301, %v1533_v13   ;;  %v3635_v13 = vld [vmem:[%s5788_s6 + $0x1a8] sm:$0xff] }
  0xa9   : > { %1684 = vperm.xlu1 %4302, %v1534_v14  }
  0xac   : > { %1465 = vperm.xlu0 %4301, %v1311_v15   ;;  %v3604_v15 = vld [vmem:[%s5787_s5 + $0x1b0] sm:$0xff] }
  0xad   : > { %1470 = vperm.xlu1 %4302, %v1312_v16   ;;  %v3605_v16 = vld [vmem:[%s5787_s5 + $0x1b8] sm:$0xff] }
  0xb0   : > { %1689 = vperm.xlu0 %4301, %v1535_v17  }
  0xb1   : > { %1694 = vperm.xlu1 %4302, %v1536_v18  }
  0xb3   : > { %v4919_v41 = vpop.permute.xlu0 %1315 }
  0xb4   : > { %2130 = vperm.xlu0 %4301, %v3582_v19   ;;  %v4921_v42 = vpop.permute.xlu1 %1539  ;;  %v3636_v19 = vld [vmem:[%s5788_s6 + $0x1b0] sm:$0xff] }
  0xb5   : > { %2135 = vperm.xlu1 %4302, %v3583_v20   ;;  %v3637_v20 = vld [vmem:[%s5788_s6 + $0x1b8] sm:$0xff] }
  0xb7   : > { %v4929_v45 = vpop.permute.xlu0 %1320 }
  0xb8   : > { %2355 = vperm.xlu0 %4301, %v3614_v21   ;;  %v4937_v48 = vpop.permute.xlu1 %1544 }
  0xb9   : > { %2360 = vperm.xlu1 %4302, %v3615_v22   ;;  %v3606_v22 = vld [vmem:[%s5787_s5 + $0x1c0] sm:$0xff] }
  0xbb   : > { %v4945_v51 = vpop.permute.xlu0 %1325 }
  0xbc   : > { %2140 = vperm.xlu0 %4301, %v3584_v23   ;;  %v4947_v52 = vpop.permute.xlu1 %1330  ;;  %v3607_v23 = vld [vmem:[%s5787_s5 + $0x1c8] sm:$0xff] }
  0xbd   : > { %2145 = vperm.xlu1 %4302, %v3585_v24  }
  0xbf   : > { %v4955_v55 = vpop.permute.xlu0 %1549 }
  0xc0   : > { %2365 = vperm.xlu0 %4301, %v3616_v25   ;;  %v4963_v58 = vpop.permute.xlu1 %1554  ;;  %v3638_v25 = vld [vmem:[%s5788_s6 + $0x1c0] sm:$0xff] }
  0xc1   : > { %2370 = vperm.xlu1 %4302, %v3617_v26   ;;  %v3639_v26 = vld [vmem:[%s5788_s6 + $0x1c8] sm:$0xff] }
  0xc3   : > { %v4971_v61 = vpop.permute.xlu0 %1335 }
  0xc4   : > { %2150 = vperm.xlu0 %4301, %v3586_v27   ;;  %v4973_v62 = vpop.permute.xlu1 %1340  ;;  %v5052_v27 = vld [vmem:[%s5784_s2] ss:$0 sm:$0xff] }
  0xc5   : > { %2155 = vperm.xlu1 %4302, %v3587_v28  }
  0xc7   : > { %v4981_v1 = vpop.permute.xlu0 %1559 }
  0xc8   : > { %2375 = vperm.xlu0 %4301, %v3618_v29   ;;  %v4989_v4 = vpop.permute.xlu1 %1564 }
  0xc9   : > { %2380 = vperm.xlu1 %4302, %v3619_v30  }
  0xcb   : > { %v4997_v7 = vpop.permute.xlu0 %1345 }
  0xcc   : > { %2160 = vperm.xlu0 %4301, %v3588_v31   ;;  %v4999_v8 = vpop.permute.xlu1 %1350 }
  0xcd   : > { %2165 = vperm.xlu1 %4302, %v3589_v32  }
  0xcf   : > { %v5007_v11 = vpop.permute.xlu0 %1569 }
  0xd0   : > { %2385 = vperm.xlu0 %4301, %v3620_v33   ;;  %v5015_v14 = vpop.permute.xlu1 %1574  ;;  %v3608_v33 = vld [vmem:[%s5787_s5 + $0x1d0] sm:$0xff] }
  0xd1   : > { %2390 = vperm.xlu1 %4302, %v3621_v34   ;;  %v3609_v34 = vld [vmem:[%s5787_s5 + $0x1d8] sm:$0xff] }
  0xd3   : > { %v5023_v17 = vpop.permute.xlu0 %1355 }
  0xd4   : > { %2170 = vperm.xlu0 %4301, %v3590_v35   ;;  %v5025_v18 = vpop.permute.xlu1 %1360 }
  0xd5   : > { %2175 = vperm.xlu1 %4302, %v3591_v36  }
  0xd7   : > { %v5033_v21 = vpop.permute.xlu0 %1579 }
  0xd8   : > { %2395 = vperm.xlu0 %4301, %v3622_v37   ;;  %v5041_v24 = vpop.permute.xlu1 %1584 }
  0xd9   : > { %2400 = vperm.xlu1 %4302, %v3623_v38  }
  0xdb   : > { %v5054_v28 = vpop.permute.xlu0 %1365 }
  0xdc   : > { %2180 = vperm.xlu0 %4301, %v3592_v39   ;;  %v5056_v29 = vpop.permute.xlu1 %1370 }
  0xdd   : > { %2185 = vperm.xlu1 %4302, %v3593_v40  }
  0xdf   : > { %v5066_v38 = vpop.permute.xlu0 %1589 }
  0xe0   : > { %2405 = vperm.xlu0 %4301, %v3624_v43  }
  0xe1   : > { %2410 = vperm.xlu1 %4302, %v3625_v44   ;;  %v3640_v44 = vld [vmem:[%s5788_s6 + $0x1d0] sm:$0xff] }
  0xe4   : > { %2190 = vperm.xlu0 %4301, %v3594_v46   ;;  %v3641_v46 = vld [vmem:[%s5788_s6 + $0x1d8] sm:$0xff] }
  0xe5   : > { %2195 = vperm.xlu1 %4302, %v3595_v47   ;;  %v5075_v47 = vpop.permute.xlu1 %1594 }
  0xe8   : > { %2415 = vperm.xlu0 %4301, %v3626_v49  }
  0xe9   : > { %2420 = vperm.xlu1 %4302, %v3627_v50  }
  0xec   : > { %2200 = vperm.xlu0 %4301, %v3596_v53  }
  0xed   : > { %2205 = vperm.xlu1 %4302, %v3597_v54  }
  0xf0   : > { %2425 = vperm.xlu0 %4301, %v3628_v56  }
  0xf1   : > { %2430 = vperm.xlu1 %4302, %v3629_v57  }
  0xf4   : > { %2210 = vperm.xlu0 %4301, %v3598_v59   ;;  %v3610_v59 = vld [vmem:[%s5787_s5 + $0x1e0] sm:$0xff] }
  0xf5   : > { %2215 = vperm.xlu1 %4302, %v3599_v60   ;;  %v3611_v60 = vld [vmem:[%s5787_s5 + $0x1e8] sm:$0xff] }
  0xf8   : > { %2435 = vperm.xlu0 %4301, %v3630_v63  }
  0xf9   : > { %2440 = vperm.xlu1 %4302, %v3631_v0   ;;  %v5089_v0 = vpop.permute.xlu0 %1375 }
  0xfc   : > { %2220 = vperm.xlu0 %4301, %v3600_v2   ;;  %v5092_v2 = vpop.permute.xlu1 %1380 }
  0xfd   : > { %2225 = vperm.xlu1 %4302, %v3601_v3  }
 0x100   : > { %2445 = vperm.xlu0 %4301, %v3632_v5  }
 0x101   : > { %2450 = vperm.xlu1 %4302, %v3633_v6  }
 0x104   : > { %2230 = vperm.xlu0 %4301, %v3602_v9  }
 0x105   : > { %2235 = vperm.xlu1 %4302, %v3603_v10  }
 0x108   : > { %2455 = vperm.xlu0 %4301, %v3634_v12   ;;  %v3642_v12 = vld [vmem:[%s5788_s6 + $0x1e0] sm:$0xff] }
 0x109   : > { %2460 = vperm.xlu1 %4302, %v3635_v13   ;;  %v3643_v13 = vld [vmem:[%s5788_s6 + $0x1e8] sm:$0xff] }
 0x10c   : > { %2240 = vperm.xlu0 %4301, %v3604_v15  }
 0x10d   : > { %2245 = vperm.xlu1 %4302, %v3605_v16  }
 0x110   : > { %2465 = vperm.xlu0 %4301, %v3636_v19  }
 0x111   : > { %2470 = vperm.xlu1 %4302, %v3637_v20   ;;  %v5104_v20 = vpop.permute.xlu0 %1599 }
 0x114   : > { %2250 = vperm.xlu0 %4301, %v3606_v22  }
 0x115   : > { %2255 = vperm.xlu1 %4302, %v3607_v23  }
 0x118   : > { %v3921_v30 = vpop.f32.mrb[0].mxu0  ;;  %2475 = vperm.xlu0 %4301, %v3638_v25  }
 0x119   : > { %2480 = vperm.xlu1 %4302, %v3639_v26   ;;  %v763_v31 = vadd.f32 %v3921_v30, %v5052_v27  ;;  %v757_v32 = vpop.f32.mrb[1].mxu0  ;;  %v3612_v26 = vld [vmem:[%s5787_s5 + $0x1f0] sm:$0xff]  ;;  %v3613_v30 = vld [vmem:[%s5787_s5 + $0x1f8] sm:$0xff] }
 0x11a   : > { %v758_v35 = vadd.f32 %v5052_v27, %v757_v32 }
 0x11b   : > { %v917_v39 = vmax.f32 %v763_v31, 0.0  ;;  %v5113_v31 = vpop.permute.xlu1 %1604 }
 0x11c   : > { %v916_v36 = vmax.f32 %v758_v35, 0.0  ;;  %v3924_v37 = vpop.f32.mrb[2].mxu0  ;;  %2260 = vperm.xlu0 %4301, %v3608_v33  }
 0x11d   : > { %2265 = vperm.xlu1 %4302, %v3609_v34   ;;  %v773_v40 = vadd.f32 %v3924_v37, %v5052_v27  ;;  %v767_v43 = vpop.f32.mrb[3].mxu0 }
 0x11e   : > { %v768_v49 = vadd.f32 %v5052_v27, %v767_v43  ;;  %3975 = vmatprep.mubr.msk.f32.mxu0 %vm959_vm1, %v916_v36 }
 0x11f   : > { %3976 = vmatmul.mubr.msk.f32.vlgmr.msra.gmra.mrb[32].mxu0 %vm959_vm1, %v917_v39  ;;  %v919_v54 = vmax.f32 %v773_v40, 0.0  ;;  %v3644_v39 = vld [vmem:[%s5788_s6 + $0x1f0] sm:$0xff]  ;;  %v3645_v40 = vld [vmem:[%s5788_s6 + $0x1f8] sm:$0xff] }
 0x120   : > { %v918_v50 = vmax.f32 %v768_v49, 0.0  ;;  %v3927_v53 = vpop.f32.mrb[4].mxu0  ;;  %2485 = vperm.xlu0 %4301, %v3640_v44   ;;  %v5127_v44 = vpop.permute.xlu0 %1385  ;;  %v3545_v49 = vld [vmem:[%s5785_s3 + $0x28] sm:$0xff] }
 0x121   : > { %2490 = vperm.xlu1 %4302, %v3641_v46   ;;  %v783_v56 = vadd.f32 %v3927_v53, %v5052_v27  ;;  %v777_v57 = vpop.f32.mrb[5].mxu0  ;;  %v3544_v46 = vld [vmem:[%s5785_s3 + $0x20] sm:$0xff] }
 0x122   : > { %v778_v63 = vadd.f32 %v5052_v27, %v777_v57  ;;  %3978 = vmatprep.mubr.msk.f32.mxu0 %vm959_vm1, %v918_v50  ;;  %v5136_v50 = vpop.permute.xlu1 %1390 }
 0x123   : > { %3979 = vmatmul.mubr.msk.f32.gmra.mrb[34].mxu0 %vm959_vm1, %v919_v54  ;;  %v921_v6 = vmax.f32 %v783_v56, 0.0  ;;  %v4215_v56 = vpack.c.bf16 %v3545_v49, %v3544_v46 }
 0x124   : > { %v920_v3 = vmax.f32 %v778_v63, 0.0  ;;  %v3930_v5 = vpop.f32.mrb[6].mxu0  ;;  %2270 = vperm.xlu0 %4301, %v3610_v59  }
 0x125   : > { %2275 = vperm.xlu1 %4302, %v3611_v60   ;;  %v793_v9 = vadd.f32 %v3930_v5, %v5052_v27  ;;  %v787_v10 = vpop.f32.mrb[7].mxu0  ;;  %4216 = vmatprep.subr.bf16.mxu1 %v4215_v56 }
 0x126   : > { %v788_v15 = vadd.f32 %v5052_v27, %v787_v10  ;;  %3981 = vmatprep.mubr.msk.f32.mxu0 %vm959_vm1, %v920_v3 }
 0x127   : > { %3982 = vmatmul.mubr.msk.f32.gmra.mrb[36].mxu0 %vm959_vm1, %v921_v6  ;;  %v923_v22 = vmax.f32 %v793_v9, 0.0 }
 0x128   : > { %v922_v16 = vmax.f32 %v788_v15, 0.0  ;;  %v3933_v19 = vpop.f32.mrb[8].mxu0  ;;  %2495 = vperm.xlu0 %4301, %v3642_v12   ;;  %v3547_v15 = vld [vmem:[%s5785_s3 + $0x38] sm:$0xff] }
 0x129   : > { %2500 = vperm.xlu1 %4302, %v3643_v13   ;;  %v803_v23 = vadd.f32 %v3933_v19, %v5052_v27  ;;  %v797_v25 = vpop.f32.mrb[9].mxu0  ;;  %v3546_v13 = vld [vmem:[%s5785_s3 + $0x30] sm:$0xff] }
 0x12a   : > { %v798_v32 = vadd.f32 %v5052_v27, %v797_v25  ;;  %3984 = vmatprep.mubr.msk.f32.mxu0 %vm959_vm1, %v922_v16 }
 0x12b   : > { %3985 = vmatmul.mubr.msk.f32.gmra.mrb[38].mxu0 %vm959_vm1, %v923_v22  ;;  %v925_v35 = vmax.f32 %v803_v23, 0.0 }
 0x12c   : > { %v924_v33 = vmax.f32 %v798_v32, 0.0  ;;  %v3936_v34 = vpop.f32.mrb[10].mxu0  ;;  %2280 = vperm.xlu0 %4301, %v3612_v26   ;;  %v4219_v26 = vpack.c.bf16 %v3547_v15, %v3546_v13 }
 0x12d   : > { %2285 = vperm.xlu1 %4302, %v3613_v30   ;;  %v813_v36 = vadd.f32 %v3936_v34, %v5052_v27  ;;  %v807_v37 = vpop.f32.mrb[11].mxu0 }
 0x12e   : > { %v808_v43 = vadd.f32 %v5052_v27, %v807_v37  ;;  %3987 = vmatprep.mubr.msk.f32.mxu0 %vm959_vm1, %v924_v33 }
 0x12f   : > { %3988 = vmatmul.mubr.msk.f32.gmra.mrb[40].mxu0 %vm959_vm1, %v925_v35  ;;  %v927_v57 = vmax.f32 %v813_v36, 0.0 }
 0x130   : > { %v926_v53 = vmax.f32 %v808_v43, 0.0  ;;  %v3939_v54 = vpop.f32.mrb[12].mxu0  ;;  %2505 = vperm.xlu0 %4301, %v3644_v39  }
 0x131   : > { %2510 = vperm.xlu1 %4302, %v3645_v40   ;;  %v823_v59 = vadd.f32 %v3939_v54, %v5052_v27  ;;  %v817_v60 = vpop.f32.mrb[13].mxu0 }
 0x132   : > { %v818_v63 = vadd.f32 %v5052_v27, %v817_v60  ;;  %3990 = vmatprep.mubr.msk.f32.mxu0 %vm959_vm1, %v926_v53 }
 0x133   : > { %3991 = vmatmul.mubr.msk.f32.gmra.mrb[42].mxu0 %vm959_vm1, %v927_v57  ;;  %v929_v6 = vmax.f32 %v823_v59, 0.0 }
 0x134   : > { %v928_v3 = vmax.f32 %v818_v63, 0.0  ;;  %v3942_v5 = vpop.f32.mrb[14].mxu0 }
 0x135   : > { %v833_v9 = vadd.f32 %v3942_v5, %v5052_v27  ;;  %v827_v10 = vpop.f32.mrb[15].mxu0 }
 0x136   : > { %v828_v12 = vadd.f32 %v5052_v27, %v827_v10  ;;  %3993 = vmatprep.mubr.msk.f32.mxu0 %vm959_vm1, %v928_v3 }
 0x137   : > { %3994 = vmatmul.mubr.msk.f32.gmra.mrb[44].mxu0 %vm959_vm1, %v929_v6  ;;  %v931_v22 = vmax.f32 %v833_v9, 0.0 }
 0x138   : > { %v930_v16 = vmax.f32 %v828_v12, 0.0  ;;  %v3945_v19 = vpop.f32.mrb[16].mxu0 }
 0x139   : > { %v843_v23 = vadd.f32 %v3945_v19, %v5052_v27  ;;  %v837_v25 = vpop.f32.mrb[17].mxu0 }
 0x13a   : > { %v838_v30 = vadd.f32 %v5052_v27, %v837_v25  ;;  %3996 = vmatprep.mubr.msk.f32.mxu1 %vm959_vm1, %v930_v16 }
 0x13b   : > { %3997 = vmatmul.mubr.msk.f32.vlgmr.msra.gmra.mrb[0].mxu1 %vm959_vm1, %v931_v22  ;;  %v933_v34 = vmax.f32 %v843_v23, 0.0 }
 0x13c   : > { %v932_v32 = vmax.f32 %v838_v30, 0.0  ;;  %v3948_v33 = vpop.f32.mrb[18].mxu0  ;;  %4218 = vmatpush3.bf16.msra.mxu1 %v4215_v56 }
 0x13d   : > { %v853_v35 = vadd.f32 %v3948_v33, %v5052_v27  ;;  %v847_v36 = vpop.f32.mrb[19].mxu0  ;;  %4220 = vmatprep.subr.bf16.mxu1 %v4219_v26 }
 0x13e   : > { %v848_v37 = vadd.f32 %v5052_v27, %v847_v36  ;;  %3999 = vmatprep.mubr.msk.f32.mxu1 %vm959_vm1, %v932_v32 }
 0x13f   : > { %4000 = vmatmul.mubr.msk.f32.gmra.mrb[2].mxu1 %vm959_vm1, %v933_v34  ;;  %v935_v43 = vmax.f32 %v853_v35, 0.0 }
 0x140   : > { %v934_v39 = vmax.f32 %v848_v37, 0.0  ;;  %v3951_v40 = vpop.f32.mrb[20].mxu0  ;;  %4222 = vmatpush3.bf16.msra.mxu1 %v4219_v26 }
 0x141   : > { %v863_v46 = vadd.f32 %v3951_v40, %v5052_v27  ;;  %v857_v49 = vpop.f32.mrb[21].mxu0 }
 0x142   : > { %v858_v53 = vadd.f32 %v5052_v27, %v857_v49  ;;  %4002 = vmatprep.mubr.msk.f32.mxu1 %vm959_vm1, %v934_v39 }
 0x143   : > { %4003 = vmatmul.mubr.msk.f32.gmra.mrb[4].mxu1 %vm959_vm1, %v935_v43  ;;  %v937_v57 = vmax.f32 %v863_v46, 0.0 }
 0x144   : > { %v936_v54 = vmax.f32 %v858_v53, 0.0  ;;  %v3954_v56 = vpop.f32.mrb[22].mxu0  ;;  %v2577_v53 = vld [vmem:[%s5789_s7] sm:$0xff] }
 0x145   : > { %v873_v59 = vadd.f32 %v3954_v56, %v5052_v27  ;;  %v867_v60 = vpop.f32.mrb[23].mxu0 }
 0x146   : > { %v868_v63 = vadd.f32 %v5052_v27, %v867_v60  ;;  %4005 = vmatprep.mubr.msk.f32.mxu1 %vm959_vm1, %v936_v54  ;;  %v2578_v54 = vld [vmem:[%s5789_s7 + $0x8] sm:$0xff]  ;;  %v5198_v60 = vpop.permute.xlu1 %1614 }
 0x147   : > { %4006 = vmatmul.mubr.msk.f32.gmra.mrb[6].mxu1 %vm959_vm1, %v937_v57  ;;  %v939_v6 = vmax.f32 %v873_v59, 0.0  ;;  %v4223_v56 = vpack.c.bf16 %v2578_v54, %v2577_v53  ;;  %v2580_v57 = vld [vmem:[%s5789_s7 + $0x18] sm:$0xff] }
 0x148   : > { %v938_v3 = vmax.f32 %v868_v63, 0.0  ;;  %v3957_v5 = vpop.f32.mrb[24].mxu0  ;;  %v5200_v63 = vpop.permute.xlu0 %1609 }
 0x149   : > { %v883_v9 = vadd.f32 %v3957_v5, %v5052_v27  ;;  %v877_v10 = vpop.f32.mrb[25].mxu0  ;;  %4224 = vmatprep.subr.bf16.mxu0 %v4223_v56 }
 0x14a   : > { %v878_v12 = vadd.f32 %v5052_v27, %v877_v10  ;;  %4008 = vmatprep.mubr.msk.f32.mxu1 %vm959_vm1, %v938_v3  ;;  %4226 = vmatpush3.bf16.msra.mxu0 %v4223_v56  ;;  %v5202_v3 = vpop.permute.xlu1 %1400 }
 0x14b   : > { %4009 = vmatmul.mubr.msk.f32.gmra.mrb[8].mxu1 %vm959_vm1, %v939_v6  ;;  %v941_v16 = vmax.f32 %v883_v9, 0.0 }
 0x14c   : > { %v940_v13 = vmax.f32 %v878_v12, 0.0  ;;  %v3960_v15 = vpop.f32.mrb[26].mxu0  ;;  %v5204_v5 = vpop.permute.xlu0 %1395 }
 0x14d   : > { %v893_v19 = vadd.f32 %v3960_v15, %v5052_v27  ;;  %v887_v22 = vpop.f32.mrb[27].mxu0 }
 0x14e   : > { %v888_v23 = vadd.f32 %v5052_v27, %v887_v22  ;;  %4011 = vmatprep.mubr.msk.f32.mxu1 %vm959_vm1, %v940_v13  ;;  %v5206_v6 = vpop.permute.xlu1 %1624 }
 0x14f   : > { %4012 = vmatmul.mubr.msk.f32.gmra.mrb[10].mxu1 %vm959_vm1, %v941_v16  ;;  %v943_v30 = vmax.f32 %v893_v19, 0.0  ;;  %v5223_v19 = vld [vmem:[%s5786_s4] ss:$0 sm:$0xff] }
 0x150   : > { %v942_v25 = vmax.f32 %v888_v23, 0.0  ;;  %v3963_v26 = vpop.f32.mrb[28].mxu0  ;;  %v5208_v9 = vpop.permute.xlu0 %1619 }
 0x151   : > { %v903_v32 = vadd.f32 %v3963_v26, %v5052_v27  ;;  %v897_v33 = vpop.f32.mrb[29].mxu0 }
 0x152   : > { %v898_v34 = vadd.f32 %v5052_v27, %v897_v33  ;;  %4014 = vmatprep.mubr.msk.f32.mxu1 %vm959_vm1, %v942_v25  ;;  %v5210_v10 = vpop.permute.xlu1 %1410 }
 0x153   : > { %4015 = vmatmul.mubr.msk.f32.gmra.mrb[12].mxu1 %vm959_vm1, %v943_v30  ;;  %v945_v37 = vmax.f32 %v903_v32, 0.0 }
 0x154   : > { %v944_v35 = vmax.f32 %v898_v34, 0.0  ;;  %v3966_v36 = vpop.f32.mrb[30].mxu0  ;;  %v5212_v12 = vpop.permute.xlu0 %1405 }
 0x155   : > { %v913_v39 = vadd.f32 %v3966_v36, %v5052_v27  ;;  %v907_v40 = vpop.f32.mrb[31].mxu0 }
 0x156   : > { %v908_v43 = vadd.f32 %v5052_v27, %v907_v40  ;;  %4017 = vmatprep.mubr.msk.f32.mxu1 %vm959_vm1, %v944_v35  ;;  %v2579_v27 = vld [vmem:[%s5789_s7 + $0x10] sm:$0xff]  ;;  %v5214_v13 = vpop.permute.xlu1 %1634 }
 0x157   : > { %4018 = vmatmul.mubr.msk.f32.gmra.mrb[14].mxu1 %vm959_vm1, %v945_v37  ;;  %v947_v49 = vmax.f32 %v913_v39, 0.0  ;;  %v4227_v59 = vpack.c.bf16 %v2580_v57, %v2579_v27 }
 0x158   : > { %v946_v46 = vmax.f32 %v908_v43, 0.0  ;;  %v5216_v15 = vpop.permute.xlu0 %1629 }
 0x159   : > { %4228 = vmatprep.subr.bf16.mxu0 %v4227_v59 }
 0x15a   : > { %4020 = vmatprep.mubr.msk.f32.mxu1 %vm959_vm1, %v946_v46  ;;  %4230 = vmatpush3.bf16.msra.mxu0 %v4227_v59  ;;  %v5218_v16 = vpop.permute.xlu1 %1420 }
 0x15b   : > { %4021 = vmatmul.mubr.msk.f32.gmra.mrb[16].mxu1 %vm959_vm1, %v947_v49 }
 0x15c   : > { %v5225_v22 = vpop.permute.xlu0 %1415 }
 0x15e   : > { %v5230_v33 = vpop.permute.xlu1 %1644 }
 0x160   : > { %v5233_v36 = vpop.permute.xlu0 %1639 }
 0x1f2   : > { %v3977_v23 = vpop.f32.mrb[32].mxu0 }
 0x1f3   : > { %v1128_v25 = vadd.f32 %v3977_v23, %v5223_v19  ;;  %v1122_v26 = vpop.f32.mrb[33].mxu0  ;;  %v5248_v23 = vpop.permute.xlu0 %1425 }
 0x1f4   : > { %v1123_v30 = vadd.f32 %v5223_v19, %v1122_v26 }
 0x1f5   : > { %v1474_v32 = vmul.f32 %v4929_v45, %v1128_v25 }
 0x1f6   : > { %v1473_v34 = vmul.f32 %v4919_v41, %v1123_v30  ;;  %v3980_v35 = vpop.f32.mrb[34].mxu0 }
 0x1f7   : > { %v1698_v37 = vadd.f32 %v4937_v48, %v1474_v32  ;;  %v1138_v39 = vadd.f32 %v3980_v35, %v5223_v19  ;;  %v1132_v40 = vpop.f32.mrb[35].mxu0  ;;  %v5243_v48 = vpop.permute.xlu1 %1430 }
 0x1f8   : > { %v1697_v43 = vadd.f32 %v4921_v42, %v1473_v34  ;;  %v1133_v46 = vadd.f32 %v5223_v19, %v1132_v40 }
 0x1f9   : > { %v1476_v49 = vmul.f32 %v4947_v52, %v1138_v39  ;;  %v1730_v27 = vmax.f32 %v1698_v37, 0.0 }
 0x1fa   : > { %v1729_v53 = vmax.f32 %v1697_v43, 0.0  ;;  %v1475_v45 = vmul.f32 %v4945_v51, %v1133_v46  ;;  %v3983_v54 = vpop.f32.mrb[36].mxu0 }
 0x1fb   : > { %v1700_v41 = vadd.f32 %v4963_v58, %v1476_v49  ;;  %v1148_v56 = vadd.f32 %v3983_v54, %v5223_v19  ;;  %v1142_v57 = vpop.f32.mrb[37].mxu0  ;;  %v5260_v37 = vpop.permute.xlu1 %1654 }
 0x1fc   : > { %v1699_v59 = vadd.f32 %v4955_v55, %v1475_v45  ;;  %v1143_v42 = vadd.f32 %v5223_v19, %v1142_v57  ;;  %4031 = vmatprep.mubr.msk.f32.mxu1 %vm959_vm1, %v1729_v53 }
 0x1fd   : > { %v1478_v52 = vmul.f32 %v4973_v62, %v1148_v56  ;;  %4032 = vmatmul.mubr.msk.f32.vlgmr.msra.gmra.mrb[18].mxu1 %vm959_vm1, %v1730_v27  ;;  %v1732_v26 = vmax.f32 %v1700_v41, 0.0 }
 0x1fe   : > { %v1731_v51 = vmax.f32 %v1699_v59, 0.0  ;;  %v1477_v58 = vmul.f32 %v4971_v61, %v1143_v42  ;;  %v3986_v25 = vpop.f32.mrb[38].mxu0 }
 0x1ff   : > { %v1702_v30 = vadd.f32 %v4989_v4, %v1478_v52  ;;  %v1158_v32 = vadd.f32 %v3986_v25, %v5223_v19  ;;  %v1152_v55 = vpop.f32.mrb[39].mxu0  ;;  %v5263_v4 = vpop.permute.xlu0 %1649 }
 0x200   : > { %v1701_v34 = vadd.f32 %v4981_v1, %v1477_v58  ;;  %v1153_v35 = vadd.f32 %v5223_v19, %v1152_v55  ;;  %4034 = vmatprep.mubr.msk.f32.mxu1 %vm959_vm1, %v1731_v51  ;;  %v5275_v59 = vpop.permute.xlu1 %1440 }
 0x201   : > { %v1480_v62 = vmul.f32 %v4999_v8, %v1158_v32  ;;  %4035 = vmatmul.mubr.msk.f32.gmra.mrb[20].mxu1 %vm959_vm1, %v1732_v26  ;;  %v1734_v43 = vmax.f32 %v1702_v30, 0.0 }
 0x202   : > { %v1733_v61 = vmax.f32 %v1701_v34, 0.0  ;;  %v1479_v39 = vmul.f32 %v4997_v7, %v1153_v35  ;;  %v3989_v40 = vpop.f32.mrb[40].mxu0 }
 0x203   : > { %v1704_v46 = vadd.f32 %v5015_v14, %v1480_v62  ;;  %v1168_v1 = vadd.f32 %v3989_v40, %v5223_v19  ;;  %v1162_v49 = vpop.f32.mrb[41].mxu0 }
 0x204   : > { %v1703_v53 = vadd.f32 %v5007_v11, %v1479_v39  ;;  %v1163_v8 = vadd.f32 %v5223_v19, %v1162_v49  ;;  %4037 = vmatprep.mubr.msk.f32.mxu1 %vm959_vm1, %v1733_v61  ;;  %v5292_v55 = vpop.permute.xlu1 %1664 }
 0x205   : > { %v1482_v45 = vmul.f32 %v5025_v18, %v1168_v1  ;;  %4038 = vmatmul.mubr.msk.f32.gmra.mrb[22].mxu1 %vm959_vm1, %v1734_v43  ;;  %v1736_v41 = vmax.f32 %v1704_v46, 0.0  ;;  %v5280_v18 = vpop.permute.xlu0 %1435 }
 0x206   : > { %v1735_v7 = vmax.f32 %v1703_v53, 0.0  ;;  %v1481_v54 = vmul.f32 %v5023_v17, %v1163_v8  ;;  %v3992_v27 = vpop.f32.mrb[42].mxu0 }
 0x207   : > { %v1706_v14 = vadd.f32 %v5041_v24, %v1482_v45  ;;  %v1178_v56 = vadd.f32 %v3992_v27, %v5223_v19  ;;  %v1172_v57 = vpop.f32.mrb[43].mxu0 }
 0x208   : > { %v1705_v11 = vadd.f32 %v5033_v21, %v1481_v54  ;;  %v1173_v42 = vadd.f32 %v5223_v19, %v1172_v57  ;;  %4040 = vmatprep.mubr.msk.f32.mxu1 %vm959_vm1, %v1735_v7  ;;  %v5307_v45 = vpop.permute.xlu1 %1450 }
 0x209   : > { %v1484_v52 = vmul.f32 %v5056_v29, %v1178_v56  ;;  %4041 = vmatmul.mubr.msk.f32.gmra.mrb[24].mxu1 %vm959_vm1, %v1736_v41  ;;  %v1738_v58 = vmax.f32 %v1706_v14, 0.0 }
 0x20a   : > { %v1737_v17 = vmax.f32 %v1705_v11, 0.0  ;;  %v1483_v24 = vmul.f32 %v5054_v28, %v1173_v42  ;;  %v3995_v51 = vpop.f32.mrb[44].mxu0 }
 0x20b   : > { %v1708_v25 = vadd.f32 %v5075_v47, %v1484_v52  ;;  %v1188_v26 = vadd.f32 %v3995_v51, %v5223_v19  ;;  %v1182_v21 = vpop.f32.mrb[45].mxu0  ;;  %v5295_v47 = vpop.permute.xlu0 %1659 }
 0x20c   : > { %v1707_v30 = vadd.f32 %v5066_v38, %v1483_v24  ;;  %v1183_v32 = vadd.f32 %v5223_v19, %v1182_v21  ;;  %4043 = vmatprep.mubr.msk.f32.mxu1 %vm959_vm1, %v1737_v17  ;;  %v1675_v42 = vpop.permute.xlu1 %1674 }
 0x20d   : > { %v1486_v29 = vmul.f32 %v5092_v2, %v1188_v26  ;;  %4044 = vmatmul.mubr.msk.f32.gmra.mrb[26].mxu1 %vm959_vm1, %v1738_v58  ;;  %v1740_v62 = vmax.f32 %v1708_v25, 0.0 }
 0x20e   : > { %v1739_v28 = vmax.f32 %v1707_v30, 0.0  ;;  %v1485_v34 = vmul.f32 %v5089_v0, %v1183_v32  ;;  %v3998_v35 = vpop.f32.mrb[0].mxu1 }
 0x20f   : > { %v1710_v61 = vadd.f32 %v5113_v31, %v1486_v29  ;;  %v1198_v38 = vadd.f32 %v3998_v35, %v5223_v19  ;;  %v1192_v39 = vpop.f32.mrb[1].mxu1 }
 0x210   : > { %v1709_v40 = vadd.f32 %v5104_v20, %v1485_v34  ;;  %v1193_v2 = vadd.f32 %v5223_v19, %v1192_v39  ;;  %4046 = vmatprep.mubr.msk.f32.mxu1 %vm959_vm1, %v1739_v28  ;;  %v1461_v34 = vpop.permute.xlu1 %1460 }
 0x211   : > { %v1488_v43 = vmul.f32 %v5136_v50, %v1198_v38  ;;  %4047 = vmatmul.mubr.msk.f32.gmra.mrb[28].mxu1 %vm959_vm1, %v1740_v62  ;;  %v1742_v49 = vmax.f32 %v1710_v61, 0.0  ;;  %v5312_v50 = vpop.permute.xlu0 %1445 }
 0x212   : > { %v1741_v0 = vmax.f32 %v1709_v40, 0.0  ;;  %v1487_v46 = vmul.f32 %v5127_v44, %v1193_v2  ;;  %v4001_v1 = vpop.f32.mrb[2].mxu1 }
 0x213   : > { %v1712_v31 = vadd.f32 %v5198_v60, %v1488_v43  ;;  %v1208_v53 = vadd.f32 %v4001_v1, %v5223_v19  ;;  %v1202_v8 = vpop.f32.mrb[3].mxu1 }
 0x214   : > { %v1711_v20 = vadd.f32 %v5200_v63, %v1487_v46  ;;  %v1203_v7 = vadd.f32 %v5223_v19, %v1202_v8  ;;  %4049 = vmatprep.mubr.msk.f32.mxu1 %vm959_vm1, %v1741_v0  ;;  %v1685_v0 = vpop.permute.xlu1 %1684 }
 0x215   : > { %v1490_v54 = vmul.f32 %v5202_v3, %v1208_v53  ;;  %4050 = vmatmul.mubr.msk.f32.gmra.mrb[30].mxu1 %vm959_vm1, %v1742_v49  ;;  %v1744_v41 = vmax.f32 %v1712_v31, 0.0  ;;  %v1670_v24 = vpop.permute.xlu0 %1669 }
 0x216   : > { %v1743_v44 = vmax.f32 %v1711_v20, 0.0  ;;  %v1489_v60 = vmul.f32 %v5204_v5, %v1203_v7  ;;  %v4004_v27 = vpop.f32.mrb[4].mxu1 }
 0x217   : > { %v1714_v14 = vadd.f32 %v5206_v6, %v1490_v54  ;;  %v1218_v56 = vadd.f32 %v4004_v27, %v5223_v19  ;;  %v1212_v63 = vpop.f32.mrb[5].mxu1 }
 0x218   : > { %v1713_v57 = vadd.f32 %v5208_v9, %v1489_v60  ;;  %v1213_v11 = vadd.f32 %v5223_v19, %v1212_v63  ;;  %4052 = vmatprep.mubr.msk.f32.mxu1 %vm959_vm1, %v1743_v44 }
 0x219   : > { %v1492_v3 = vmul.f32 %v5210_v10, %v1218_v56  ;;  %4053 = vmatmul.mubr.msk.f32.gmra.mrb[32].mxu1 %vm959_vm1, %v1744_v41  ;;  %v1746_v6 = vmax.f32 %v1714_v14, 0.0  ;;  %v1471_v41 = vpop.permute.xlu1 %1470 }
 0x21a   : > { %v1745_v52 = vmax.f32 %v1713_v57, 0.0  ;;  %v1491_v5 = vmul.f32 %v5212_v12, %v1213_v11  ;;  %v4007_v17 = vpop.f32.mrb[6].mxu1 }
 0x21b   : > { %v1716_v51 = vadd.f32 %v5214_v13, %v1492_v3  ;;  %v1228_v58 = vadd.f32 %v4007_v17, %v5223_v19  ;;  %v1222_v9 = vpop.f32.mrb[7].mxu1 }
 0x21c   : > { %v1715_v25 = vadd.f32 %v5216_v15, %v1491_v5  ;;  %v1223_v26 = vadd.f32 %v5223_v19, %v1222_v9  ;;  %4055 = vmatprep.mubr.msk.f32.mxu1 %vm959_vm1, %v1745_v52 }
 0x21d   : > { %v1494_v10 = vmul.f32 %v5218_v16, %v1228_v58  ;;  %4056 = vmatmul.mubr.msk.f32.gmra.mrb[34].mxu1 %vm959_vm1, %v1746_v6  ;;  %v1748_v32 = vmax.f32 %v1716_v51, 0.0  ;;  %v1456_v16 = vpop.permute.xlu0 %1455  ;;  %v1695_v6 = vpop.permute.xlu1 %1694 }
 0x21e   : > { %v1747_v21 = vmax.f32 %v1715_v25, 0.0  ;;  %v1493_v12 = vmul.f32 %v5225_v22, %v1223_v26  ;;  %v4010_v30 = vpop.f32.mrb[8].mxu1 }
 0x21f   : > { %v1718_v13 = vadd.f32 %v5230_v33, %v1494_v10  ;;  %v1238_v29 = vadd.f32 %v4010_v30, %v5223_v19  ;;  %v1232_v28 = vpop.f32.mrb[9].mxu1 }
 0x220   : > { %v1717_v15 = vadd.f32 %v5233_v36, %v1493_v12  ;;  %v1233_v35 = vadd.f32 %v5223_v19, %v1232_v28  ;;  %4058 = vmatprep.mubr.msk.f32.mxu1 %vm959_vm1, %v1747_v21 }
 0x221   : > { %v1496_v62 = vmul.f32 %v5243_v48, %v1238_v29  ;;  %4059 = vmatmul.mubr.msk.f32.gmra.mrb[36].mxu1 %vm959_vm1, %v1748_v32  ;;  %v1750_v33 = vmax.f32 %v1718_v13, 0.0  ;;  %v1680_v49 = vpop.permute.xlu0 %1679 }
 0x222   : > { %v1749_v22 = vmax.f32 %v1717_v15, 0.0  ;;  %v1495_v61 = vmul.f32 %v5248_v23, %v1233_v35  ;;  %v4013_v38 = vpop.f32.mrb[10].mxu1 }
 0x223   : > { %v1720_v39 = vadd.f32 %v5260_v37, %v1496_v62  ;;  %v1248_v40 = vadd.f32 %v4013_v38, %v5223_v19  ;;  %v1242_v2 = vpop.f32.mrb[11].mxu1 }
 0x224   : > { %v1719_v36 = vadd.f32 %v5263_v4, %v1495_v61  ;;  %v1243_v43 = vadd.f32 %v5223_v19, %v1242_v2  ;;  %4061 = vmatprep.mubr.msk.f32.mxu1 %vm959_vm1, %v1749_v22 }
 0x225   : > { %v1498_v48 = vmul.f32 %v5275_v59, %v1248_v40  ;;  %4062 = vmatmul.mubr.msk.f32.gmra.mrb[38].mxu1 %vm959_vm1, %v1750_v33  ;;  %v1752_v37 = vmax.f32 %v1720_v39, 0.0  ;;  %v1466_v56 = vpop.permute.xlu0 %1465 }
 0x226   : > { %v1751_v46 = vmax.f32 %v1719_v36, 0.0  ;;  %v1497_v23 = vmul.f32 %v5280_v18, %v1243_v43  ;;  %v4016_v1 = vpop.f32.mrb[12].mxu1 }
 0x227   : > { %v1722_v31 = vadd.f32 %v5292_v55, %v1498_v48  ;;  %v1258_v53 = vadd.f32 %v4016_v1, %v5223_v19  ;;  %v1252_v4 = vpop.f32.mrb[13].mxu1 }
 0x228   : > { %v1721_v8 = vadd.f32 %v5295_v47, %v1497_v23  ;;  %v1253_v20 = vadd.f32 %v5223_v19, %v1252_v4  ;;  %4064 = vmatprep.mubr.msk.f32.mxu1 %vm959_vm1, %v1751_v46  ;;  %v2943_v46 = vld [vmem:[%s5791_s9 + $0x10] sm:$0xff]  ;;  %v2944_v23 = vld [vmem:[%s5791_s9 + $0x18] sm:$0xff] }
 0x229   : > { %v1500_v59 = vmul.f32 %v5307_v45, %v1258_v53  ;;  %4065 = vmatmul.mubr.msk.f32.gmra.mrb[40].mxu1 %vm959_vm1, %v1752_v37  ;;  %v1754_v44 = vmax.f32 %v1722_v31, 0.0  ;;  %v1690_v9 = vpop.permute.xlu0 %1689 }
 0x22a   : > { %v1753_v7 = vmax.f32 %v1721_v8, 0.0  ;;  %v1499_v18 = vmul.f32 %v5312_v50, %v1253_v20  ;;  %v4019_v54 = vpop.f32.mrb[14].mxu1 }
 0x22b   : > { %v1724_v60 = vadd.f32 %v1675_v42, %v1500_v59  ;;  %v1268_v55 = vadd.f32 %v4019_v54, %v5223_v19  ;;  %v1262_v27 = vpop.f32.mrb[15].mxu1 }
 0x22c   : > { %v1723_v14 = vadd.f32 %v1670_v24, %v1499_v18  ;;  %v1263_v47 = vadd.f32 %v5223_v19, %v1262_v27  ;;  %4067 = vmatprep.mubr.msk.f32.mxu1 %vm959_vm1, %v1753_v7 }
 0x22d   : > { %v1502_v63 = vmul.f32 %v1461_v34, %v1268_v55  ;;  %4068 = vmatmul.mubr.msk.f32.gmra.mrb[42].mxu1 %vm959_vm1, %v1754_v44  ;;  %v1756_v50 = vmax.f32 %v1724_v60, 0.0  ;;  %v2131_v30 = vpop.permute.xlu0 %2130 }
 0x22e   : > { %v1755_v45 = vmax.f32 %v1723_v14, 0.0  ;;  %v1501_v57 = vmul.f32 %v1456_v16, %v1263_v47  ;;  %v4022_v11 = vpop.f32.mrb[16].mxu1 }
 0x22f   : > { %v1726_v3 = vadd.f32 %v1685_v0, %v1502_v63  ;;  %v1278_v42 = vadd.f32 %v4022_v11, %v5223_v19  ;;  %v1272_v52 = vpop.f32.mrb[17].mxu1  ;;  %v5446_v63 = vld [vmem:[%s5786_s4 + $0x1] ss:$0 sm:$0xff] }
 0x230   : > { %v1725_v5 = vadd.f32 %v1680_v49, %v1501_v57  ;;  %v1273_v17 = vadd.f32 %v5223_v19, %v1272_v52  ;;  %4070 = vmatprep.mubr.msk.f32.mxu1 %vm959_vm1, %v1755_v45  ;;  %v2136_v19 = vpop.permute.xlu1 %2135  ;;  %v4231_v49 = vpack.c.bf16 %v2944_v23, %v2943_v46 }
 0x231   : > { %v1504_v24 = vmul.f32 %v1471_v41, %v1278_v42  ;;  %4071 = vmatmul.mubr.msk.f32.gmra.mrb[44].mxu1 %vm959_vm1, %v1756_v50  ;;  %v1758_v25 = vmax.f32 %v1726_v3, 0.0  ;;  %v2356_v13 = vpop.permute.xlu0 %2355 }
 0x232   : > { %v1757_v51 = vmax.f32 %v1725_v5, 0.0  ;;  %v1503_v58 = vmul.f32 %v1466_v56, %v1273_v17  ;;  %4232 = vmatprep.subr.bf16.mxu1 %v4231_v49 }
 0x233   : > { %v1728_v26 = vadd.f32 %v1695_v6, %v1504_v24  ;;  %4234 = vmatpush3.bf16.msra.mxu1 %v4231_v49 }
 0x234   : > { %v1727_v10 = vadd.f32 %v1690_v9, %v1503_v58  ;;  %4073 = vmatprep.mubr.msk.f32.mxu1 %vm959_vm1, %v1757_v51  ;;  %v2361_v32 = vpop.permute.xlu1 %2360 }
 0x235   : > { %4074 = vmatmul.mubr.msk.f32.gmra.mrb[46].mxu1 %vm959_vm1, %v1758_v25  ;;  %v1760_v12 = vmax.f32 %v1728_v26, 0.0  ;;  %v2141_v28 = vpop.permute.xlu0 %2140 }
 0x236   : > { %v1759_v21 = vmax.f32 %v1727_v10, 0.0 }
 0x238   : > { %4076 = vmatprep.mubr.msk.f32.mxu1 %vm959_vm1, %v1759_v21  ;;  %v2146_v29 = vpop.permute.xlu1 %2145 }
 0x239   : > { %4077 = vmatmul.mubr.msk.f32.gmra.mrb[48].mxu1 %vm959_vm1, %v1760_v12  ;;  %v5369_v15 = vpop.permute.xlu0 %2365 }
 0x23c   : > { %v2371_v34 = vpop.permute.xlu1 %2370 }
 0x23d   : > { %v5373_v16 = vpop.permute.xlu0 %2150 }
 0x240   : > { %v5371_v35 = vpop.permute.xlu1 %2155 }
 0x241   : > { %v5377_v22 = vpop.permute.xlu0 %2375 }
 0x244   : > { %v5375_v62 = vpop.permute.xlu1 %2380 }
 0x245   : > { %v5381_v38 = vpop.permute.xlu0 %2160 }
 0x248   : > { %v5379_v61 = vpop.permute.xlu1 %2165 }
 0x249   : > { %v5385_v39 = vpop.permute.xlu0 %2385 }
 0x24c   : > { %v5383_v33 = vpop.permute.xlu1 %2390 }
 0x24d   : > { %v5389_v2 = vpop.permute.xlu0 %2170 }
 0x250   : > { %v5387_v40 = vpop.permute.xlu1 %2175 }
 0x251   : > { %v5393_v43 = vpop.permute.xlu0 %2395 }
 0x254   : > { %v5391_v36 = vpop.permute.xlu1 %2400 }
 0x255   : > { %v5397_v0 = vpop.permute.xlu0 %2180 }
 0x258   : > { %v5395_v48 = vpop.permute.xlu1 %2185 }
 0x259   : > { %v5407_v37 = vpop.permute.xlu0 %2405 }
 0x25c   : > { %v5405_v1 = vpop.permute.xlu1 %2410 }
 0x25d   : > { %v5411_v53 = vpop.permute.xlu0 %2190 }
 0x260   : > { %v5409_v31 = vpop.permute.xlu1 %2195 }
 0x261   : > { %v5415_v8 = vpop.permute.xlu0 %2415 }
 0x264   : > { %v5413_v4 = vpop.permute.xlu1 %2420 }
 0x265   : > { %v5419_v59 = vpop.permute.xlu0 %2200 }
 0x268   : > { %v5417_v20 = vpop.permute.xlu1 %2205 }
 0x269   : > { %v5423_v18 = vpop.permute.xlu0 %2425 }
 0x26c   : > { %v5421_v7 = vpop.permute.xlu1 %2430 }
 0x26d   : > { %v5427_v44 = vpop.permute.xlu0 %2210 }
 0x270   : > { %v5425_v54 = vpop.permute.xlu1 %2215 }
 0x271   : > { %v5431_v55 = vpop.permute.xlu0 %2435 }
 0x274   : > { %v5429_v60 = vpop.permute.xlu1 %2440 }
 0x275   : > { %v5435_v41 = vpop.permute.xlu0 %2220 }
 0x278   : > { %v5433_v27 = vpop.permute.xlu1 %2225 }
 0x279   : > { %v5439_v47 = vpop.permute.xlu0 %2445 }
 0x27c   : > { %v5437_v14 = vpop.permute.xlu1 %2450 }
 0x27d   : > { %v5448_v45 = vpop.permute.xlu0 %2230 }
 0x280   : > { %v5441_v56 = vpop.permute.xlu1 %2235 }
 0x281   : > { %v5454_v24 = vpop.permute.xlu0 %2455 }
 0x284   : > { %v5452_v52 = vpop.permute.xlu1 %2460 }
 0x2d0   : > { %v4033_v57 = vpop.f32.mrb[18].mxu1 }
 0x2d1   : > { %v1942_v11 = vadd.f32 %v4033_v57, %v5446_v63  ;;  %v1936_v50 = vpop.f32.mrb[19].mxu1 }
 0x2d2   : > { %v1937_v3 = vadd.f32 %v5446_v63, %v1936_v50 }
 0x2d3   : > { %v2289_v42 = vmul.f32 %v2136_v19, %v1942_v11 }
 0x2d4   : > { %v2288_v5 = vmul.f32 %v2131_v30, %v1937_v3  ;;  %v4036_v17 = vpop.f32.mrb[20].mxu1  ;;  %v5459_v30 = vpop.permute.xlu1 %2245 }
 0x2d5   : > { %v2514_v6 = vadd.f32 %v2361_v32, %v2289_v42  ;;  %v1952_v51 = vadd.f32 %v4036_v17, %v5446_v63  ;;  %v1946_v58 = vpop.f32.mrb[21].mxu1 }
 0x2d6   : > { %v2513_v9 = vadd.f32 %v2356_v13, %v2288_v5  ;;  %v1947_v25 = vadd.f32 %v5446_v63, %v1946_v58  ;;  %v5464_v13 = vpop.permute.xlu0 %2240 }
 0x2d7   : > { %v2291_v26 = vmul.f32 %v2146_v29, %v1952_v51  ;;  %v2546_v46 = vmax.f32 %v2514_v6, 0.0 }
 0x2d8   : > { %v2545_v10 = vmax.f32 %v2513_v9, 0.0  ;;  %v2290_v21 = vmul.f32 %v2141_v28, %v1947_v25  ;;  %v4039_v12 = vpop.f32.mrb[22].mxu1  ;;  %v5476_v6 = vpop.permute.xlu1 %2470 }
 0x2d9   : > { %v2516_v23 = vadd.f32 %v2371_v34, %v2291_v26  ;;  %v1962_v19 = vadd.f32 %v4039_v12, %v5446_v63  ;;  %v1956_v49 = vpop.f32.mrb[23].mxu1 }
 0x2da   : > { %v2515_v57 = vadd.f32 %v5369_v15, %v2290_v21  ;;  %v1957_v32 = vadd.f32 %v5446_v63, %v1956_v49  ;;  %4087 = vmatprep.mubr.msk.f32.mxu0 %vm959_vm1, %v2545_v10 }
 0x2db   : > { %v2293_v29 = vmul.f32 %v5371_v35, %v1962_v19  ;;  %4088 = vmatmul.mubr.msk.f32.vlgmr.msra.gmra.mrb[46].mxu0 %vm959_vm1, %v2546_v46  ;;  %v2548_v50 = vmax.f32 %v2516_v23, 0.0 }
 0x2dc   : > { %v2547_v28 = vmax.f32 %v2515_v57, 0.0  ;;  %v2292_v34 = vmul.f32 %v5373_v16, %v1957_v32  ;;  %v4042_v11 = vpop.f32.mrb[24].mxu1  ;;  %v5491_v57 = vpop.permute.xlu1 %2255 }
 0x2dd   : > { %v2518_v3 = vadd.f32 %v5375_v62, %v2293_v29  ;;  %v1972_v42 = vadd.f32 %v4042_v11, %v5446_v63  ;;  %v1966_v15 = vpop.f32.mrb[25].mxu1  ;;  %v5479_v62 = vpop.permute.xlu0 %2465 }
 0x2de   : > { %v2517_v5 = vadd.f32 %v5377_v22, %v2292_v34  ;;  %v1967_v17 = vadd.f32 %v5446_v63, %v1966_v15  ;;  %4090 = vmatprep.mubr.msk.f32.mxu0 %vm959_vm1, %v2547_v28 }
 0x2df   : > { %v2295_v35 = vmul.f32 %v5379_v61, %v1972_v42  ;;  %4091 = vmatmul.mubr.msk.f32.gmra.mrb[48].mxu0 %vm959_vm1, %v2548_v50  ;;  %v2550_v9 = vmax.f32 %v2518_v3, 0.0 }
 0x2e0   : > { %v2549_v16 = vmax.f32 %v2517_v5, 0.0  ;;  %v2294_v51 = vmul.f32 %v5381_v38, %v1967_v17  ;;  %v4045_v58 = vpop.f32.mrb[26].mxu1  ;;  %v5508_v15 = vpop.permute.xlu1 %2480 }
 0x2e1   : > { %v2520_v25 = vadd.f32 %v5383_v33, %v2295_v35  ;;  %v1982_v22 = vadd.f32 %v4045_v58, %v5446_v63  ;;  %v1976_v26 = vpop.f32.mrb[27].mxu1 }
 0x2e2   : > { %v2519_v10 = vadd.f32 %v5385_v39, %v2294_v51  ;;  %v1977_v61 = vadd.f32 %v5446_v63, %v1976_v26  ;;  %4093 = vmatprep.mubr.msk.f32.mxu0 %vm959_vm1, %v2549_v16 }
 0x2e3   : > { %v2297_v21 = vmul.f32 %v5387_v40, %v1982_v22  ;;  %4094 = vmatmul.mubr.msk.f32.gmra.mrb[50].mxu0 %vm959_vm1, %v2550_v9  ;;  %v2552_v23 = vmax.f32 %v2520_v25, 0.0  ;;  %v5496_v40 = vpop.permute.xlu0 %2250 }
 0x2e4   : > { %v2551_v38 = vmax.f32 %v2519_v10, 0.0  ;;  %v2296_v12 = vmul.f32 %v5389_v2, %v1977_v61  ;;  %v4048_v46 = vpop.f32.mrb[28].mxu1 }
 0x2e5   : > { %v2522_v33 = vadd.f32 %v5391_v36, %v2297_v21  ;;  %v1992_v19 = vadd.f32 %v4048_v46, %v5446_v63  ;;  %v1986_v49 = vpop.f32.mrb[29].mxu1  ;;  %v5523_v21 = vpop.permute.xlu1 %2265 }
 0x2e6   : > { %v2521_v39 = vadd.f32 %v5393_v43, %v2296_v12  ;;  %v1987_v32 = vadd.f32 %v5446_v63, %v1986_v49  ;;  %4096 = vmatprep.mubr.msk.f32.mxu0 %vm959_vm1, %v2551_v38 }
 0x2e7   : > { %v2299_v29 = vmul.f32 %v5395_v48, %v1992_v19  ;;  %4097 = vmatmul.mubr.msk.f32.gmra.mrb[52].mxu0 %vm959_vm1, %v2552_v23  ;;  %v2554_v34 = vmax.f32 %v2522_v33, 0.0 }
 0x2e8   : > { %v2553_v2 = vmax.f32 %v2521_v39, 0.0  ;;  %v2298_v36 = vmul.f32 %v5397_v0, %v1987_v32  ;;  %v4051_v28 = vpop.f32.mrb[30].mxu1 }
 0x2e9   : > { %v2524_v11 = vadd.f32 %v5405_v1, %v2299_v29  ;;  %v2002_v50 = vadd.f32 %v4051_v28, %v5446_v63  ;;  %v1996_v43 = vpop.f32.mrb[31].mxu1  ;;  %v5511_v1 = vpop.permute.xlu0 %2475 }
 0x2ea   : > { %v2523_v3 = vadd.f32 %v5407_v37, %v2298_v36  ;;  %v1997_v42 = vadd.f32 %v5446_v63, %v1996_v43  ;;  %4099 = vmatprep.mubr.msk.f32.mxu0 %vm959_vm1, %v2553_v2  ;;  %v2491_v32 = vpop.permute.xlu1 %2490 }
 0x2eb   : > { %v2301_v48 = vmul.f32 %v5409_v31, %v2002_v50  ;;  %4100 = vmatmul.mubr.msk.f32.gmra.mrb[54].mxu0 %vm959_vm1, %v2554_v34  ;;  %v2556_v35 = vmax.f32 %v2524_v11, 0.0 }
 0x2ec   : > { %v2555_v0 = vmax.f32 %v2523_v3, 0.0  ;;  %v2300_v5 = vmul.f32 %v5411_v53, %v1997_v42  ;;  %v4054_v17 = vpop.f32.mrb[32].mxu1 }
 0x2ed   : > { %v2526_v16 = vadd.f32 %v5413_v4, %v2301_v48  ;;  %v2012_v37 = vadd.f32 %v4054_v17, %v5446_v63  ;;  %v2006_v51 = vpop.f32.mrb[33].mxu1 }
 0x2ee   : > { %v2525_v58 = vadd.f32 %v5415_v8, %v2300_v5  ;;  %v2007_v31 = vadd.f32 %v5446_v63, %v2006_v51  ;;  %4102 = vmatprep.mubr.msk.f32.mxu0 %vm959_vm1, %v2555_v0  ;;  %v2276_v5 = vpop.permute.xlu1 %2275 }
 0x2ef   : > { %v2303_v9 = vmul.f32 %v5417_v20, %v2012_v37  ;;  %4103 = vmatmul.mubr.msk.f32.gmra.mrb[56].mxu0 %vm959_vm1, %v2556_v35  ;;  %v2558_v26 = vmax.f32 %v2526_v16, 0.0  ;;  %v5528_v20 = vpop.permute.xlu0 %2260 }
 0x2f0   : > { %v2557_v53 = vmax.f32 %v2525_v58, 0.0  ;;  %v2302_v25 = vmul.f32 %v5419_v59, %v2007_v31  ;;  %v4057_v22 = vpop.f32.mrb[34].mxu1 }
 0x2f1   : > { %v2528_v4 = vadd.f32 %v5421_v7, %v2303_v9  ;;  %v2022_v10 = vadd.f32 %v4057_v22, %v5446_v63  ;;  %v2016_v61 = vpop.f32.mrb[35].mxu1 }
 0x2f2   : > { %v2527_v8 = vadd.f32 %v5423_v18, %v2302_v25  ;;  %v2017_v38 = vadd.f32 %v5446_v63, %v2016_v61  ;;  %4105 = vmatprep.mubr.msk.f32.mxu0 %vm959_vm1, %v2557_v53  ;;  %v2501_v53 = vpop.permute.xlu1 %2500 }
 0x2f3   : > { %v2305_v12 = vmul.f32 %v5425_v54, %v2022_v10  ;;  %4106 = vmatmul.mubr.msk.f32.gmra.mrb[58].mxu0 %vm959_vm1, %v2558_v26  ;;  %v2560_v23 = vmax.f32 %v2528_v4, 0.0  ;;  %v2486_v36 = vpop.permute.xlu0 %2485 }
 0x2f4   : > { %v2559_v59 = vmax.f32 %v2527_v8, 0.0  ;;  %v2304_v7 = vmul.f32 %v5427_v44, %v2017_v38  ;;  %v4060_v46 = vpop.f32.mrb[36].mxu1 }
 0x2f5   : > { %v2530_v33 = vadd.f32 %v5429_v60, %v2305_v12  ;;  %v2032_v19 = vadd.f32 %v4060_v46, %v5446_v63  ;;  %v2026_v18 = vpop.f32.mrb[37].mxu1 }
 0x2f6   : > { %v2529_v49 = vadd.f32 %v5431_v55, %v2304_v7  ;;  %v2027_v39 = vadd.f32 %v5446_v63, %v2026_v18  ;;  %4108 = vmatprep.mubr.msk.f32.mxu0 %vm959_vm1, %v2559_v59 }
 0x2f7   : > { %v2307_v54 = vmul.f32 %v5433_v27, %v2032_v19  ;;  %4109 = vmatmul.mubr.msk.f32.gmra.mrb[60].mxu0 %vm959_vm1, %v2560_v23  ;;  %v2562_v60 = vmax.f32 %v2530_v33, 0.0  ;;  %v2286_v23 = vpop.permute.xlu1 %2285 }
 0x2f8   : > { %v2561_v29 = vmax.f32 %v2529_v49, 0.0  ;;  %v2306_v44 = vmul.f32 %v5435_v41, %v2027_v39  ;;  %v4063_v2 = vpop.f32.mrb[38].mxu1 }
 0x2f9   : > { %v2532_v28 = vadd.f32 %v5437_v14, %v2307_v54  ;;  %v2042_v34 = vadd.f32 %v4063_v2, %v5446_v63  ;;  %v2036_v55 = vpop.f32.mrb[39].mxu1 }
 0x2fa   : > { %v2531_v11 = vadd.f32 %v5439_v47, %v2306_v44  ;;  %v2037_v50 = vadd.f32 %v5446_v63, %v2036_v55  ;;  %4111 = vmatprep.mubr.msk.f32.mxu0 %vm959_vm1, %v2561_v29 }
 0x2fb   : > { %v2309_v27 = vmul.f32 %v5441_v56, %v2042_v34  ;;  %4112 = vmatmul.mubr.msk.f32.gmra.mrb[62].mxu0 %vm959_vm1, %v2562_v60  ;;  %v2564_v42 = vmax.f32 %v2532_v28, 0.0  ;;  %v2271_v56 = vpop.permute.xlu0 %2270  ;;  %v2511_v60 = vpop.permute.xlu1 %2510 }
 0x2fc   : > { %v2563_v43 = vmax.f32 %v2531_v11, 0.0  ;;  %v2308_v41 = vmul.f32 %v5448_v45, %v2037_v50  ;;  %v4066_v3 = vpop.f32.mrb[40].mxu1 }
 0x2fd   : > { %v2534_v14 = vadd.f32 %v5452_v52, %v2309_v27  ;;  %v2052_v48 = vadd.f32 %v4066_v3, %v5446_v63  ;;  %v2046_v0 = vpop.f32.mrb[41].mxu1  ;;  %v2942_v3 = vld [vmem:[%s5791_s9 + $0x8] sm:$0xff] }
 0x2fe   : > { %v2533_v47 = vadd.f32 %v5454_v24, %v2308_v41  ;;  %v2047_v17 = vadd.f32 %v5446_v63, %v2046_v0  ;;  %4114 = vmatprep.mubr.msk.f32.mxu0 %vm959_vm1, %v2563_v43 }
 0x2ff   : > { %v2311_v35 = vmul.f32 %v5459_v30, %v2052_v48  ;;  %4115 = vmatmul.mubr.msk.f32.gmra.mrb[64].mxu0 %vm959_vm1, %v2564_v42  ;;  %v2566_v52 = vmax.f32 %v2534_v14, 0.0  ;;  %v2496_v26 = vpop.permute.xlu0 %2495 }
 0x300   : > { %v2565_v45 = vmax.f32 %v2533_v47, 0.0  ;;  %v2310_v16 = vmul.f32 %v5464_v13, %v2047_v17  ;;  %v4069_v37 = vpop.f32.mrb[42].mxu1 }
 0x301   : > { %v2536_v51 = vadd.f32 %v5476_v6, %v2311_v35  ;;  %v2062_v58 = vadd.f32 %v4069_v37, %v5446_v63  ;;  %v2056_v31 = vpop.f32.mrb[43].mxu1 }
 0x302   : > { %v2535_v24 = vadd.f32 %v5479_v62, %v2310_v16  ;;  %v2057_v9 = vadd.f32 %v5446_v63, %v2056_v31  ;;  %4117 = vmatprep.mubr.msk.f32.mxu0 %vm959_vm1, %v2565_v45 }
 0x303   : > { %v2313_v30 = vmul.f32 %v5491_v57, %v2062_v58  ;;  %4118 = vmatmul.mubr.msk.f32.gmra.mrb[66].mxu0 %vm959_vm1, %v2566_v52  ;;  %v2568_v6 = vmax.f32 %v2536_v51, 0.0  ;;  %v2281_v19 = vpop.permute.xlu0 %2280 }
 0x304   : > { %v2567_v25 = vmax.f32 %v2535_v24, 0.0  ;;  %v2312_v13 = vmul.f32 %v5496_v40, %v2057_v9  ;;  %v4072_v22 = vpop.f32.mrb[44].mxu1  ;;  %v5626_v9 = vld [vmem:[%s5790_s8] ss:$0 sm:$0xff] }
 0x305   : > { %v2538_v4 = vadd.f32 %v5508_v15, %v2313_v30  ;;  %v2072_v10 = vadd.f32 %v4072_v22, %v5446_v63  ;;  %v2066_v62 = vpop.f32.mrb[45].mxu1 }
 0x306   : > { %v2537_v61 = vadd.f32 %v5511_v1, %v2312_v13  ;;  %v2067_v8 = vadd.f32 %v5446_v63, %v2066_v62  ;;  %4120 = vmatprep.mubr.msk.f32.mxu0 %vm959_vm1, %v2567_v25 }
 0x307   : > { %v2315_v57 = vmul.f32 %v5523_v21, %v2072_v10  ;;  %4121 = vmatmul.mubr.msk.f32.gmra.mrb[68].mxu0 %vm959_vm1, %v2568_v6  ;;  %v2570_v59 = vmax.f32 %v2538_v4, 0.0  ;;  %v2506_v55 = vpop.permute.xlu0 %2505 }
 0x308   : > { %v2569_v38 = vmax.f32 %v2537_v61, 0.0  ;;  %v2314_v40 = vmul.f32 %v5528_v20, %v2067_v8  ;;  %v4075_v12 = vpop.f32.mrb[46].mxu1 }
 0x309   : > { %v2540_v7 = vadd.f32 %v2491_v32, %v2315_v57  ;;  %v2082_v15 = vadd.f32 %v4075_v12, %v5446_v63  ;;  %v2076_v46 = vpop.f32.mrb[47].mxu1 }
 0x30a   : > { %v2539_v33 = vadd.f32 %v2486_v36, %v2314_v40  ;;  %v2077_v1 = vadd.f32 %v5446_v63, %v2076_v46  ;;  %4123 = vmatprep.mubr.msk.f32.mxu0 %vm959_vm1, %v2569_v38 }
 0x30b   : > { %v2317_v18 = vmul.f32 %v2276_v5, %v2082_v15  ;;  %4124 = vmatmul.mubr.msk.f32.gmra.mrb[70].mxu0 %vm959_vm1, %v2570_v59  ;;  %v2572_v20 = vmax.f32 %v2540_v7, 0.0 }
 0x30c   : > { %v2571_v21 = vmax.f32 %v2539_v33, 0.0  ;;  %v2316_v49 = vmul.f32 %v2271_v56, %v2077_v1  ;;  %v4078_v39 = vpop.f32.mrb[48].mxu1 }
 0x30d   : > { %v2542_v54 = vadd.f32 %v2501_v53, %v2317_v18  ;;  %v2092_v32 = vadd.f32 %v4078_v39, %v5446_v63  ;;  %v2086_v29 = vpop.f32.mrb[49].mxu1 }
 0x30e   : > { %v2541_v44 = vadd.f32 %v2496_v26, %v2316_v49  ;;  %v2087_v2 = vadd.f32 %v5446_v63, %v2086_v29  ;;  %4126 = vmatprep.mubr.msk.f32.mxu0 %vm959_vm1, %v2571_v21  ;;  %v2941_v63 = vld [vmem:[%s5791_s9] sm:$0xff] }
 0x30f   : > { %v2319_v36 = vmul.f32 %v2286_v23, %v2092_v32  ;;  %4127 = vmatmul.mubr.msk.f32.gmra.mrb[72].mxu0 %vm959_vm1, %v2572_v20  ;;  %v2574_v11 = vmax.f32 %v2542_v54, 0.0  ;;  %v4235_v42 = vpack.c.bf16 %v2942_v3, %v2941_v63 }
 0x310   : > { %v2573_v28 = vmax.f32 %v2541_v44, 0.0  ;;  %v2318_v34 = vmul.f32 %v2281_v19, %v2087_v2 }
 0x311   : > { %v2544_v50 = vadd.f32 %v2511_v60, %v2319_v36  ;;  %4236 = vmatprep.subr.bf16.mxu1 %v4235_v42 }
 0x312   : > { %v2543_v27 = vadd.f32 %v2506_v55, %v2318_v34  ;;  %4129 = vmatprep.mubr.msk.f32.mxu0 %vm959_vm1, %v2573_v28 }
 0x313   : > { %4130 = vmatmul.mubr.msk.f32.gmra.mrb[74].mxu0 %vm959_vm1, %v2574_v11  ;;  %v2576_v41 = vmax.f32 %v2544_v50, 0.0 }
 0x314   : > { %v2575_v43 = vmax.f32 %v2543_v27, 0.0 }
 0x316   : > { %4132 = vmatprep.mubr.msk.f32.mxu0 %vm959_vm1, %v2575_v43 }
 0x317   : > { %4133 = vmatmul.mubr.msk.f32.gmra.mrb[76].mxu0 %vm959_vm1, %v2576_v41 }
 0x3ae   : > { %v5591_v14 = vpop.f32.mrb[46].mxu0 }
 0x3af   : > { %v5593_v48 = vpop.f32.mrb[47].mxu0 }
 0x3b0   : > { %v2751_v3 = vadd.f32 %v5626_v9, %v5593_v48 }
 0x3b2   : > { %v5595_v0 = vpop.f32.mrb[48].mxu0 }
 0x3b3   : > { %v5597_v5 = vpop.f32.mrb[49].mxu0 }
 0x3b6   : > { %v5599_v47 = vpop.f32.mrb[50].mxu0 }
 0x3b7   : > { %v5601_v17 = vpop.f32.mrb[51].mxu0 }
 0x3ba   : > { %v5603_v56 = vpop.f32.mrb[52].mxu0 }
 0x3bb   : > { %v5605_v35 = vpop.f32.mrb[53].mxu0 }
 0x3be   : > { %v5607_v45 = vpop.f32.mrb[54].mxu0 }
 0x3bf   : > { %v5609_v16 = vpop.f32.mrb[55].mxu0 }
 0x3c2   : > { %v5611_v37 = vpop.f32.mrb[56].mxu0 }
 0x3c3   : > { %v5613_v52 = vpop.f32.mrb[57].mxu0 }
 0x3c6   : > { %v5615_v51 = vpop.f32.mrb[58].mxu0 }
 0x3c7   : > { %v5617_v58 = vpop.f32.mrb[59].mxu0 }
 0x3ca   : > { %v5619_v31 = vpop.f32.mrb[60].mxu0 }
 0x3cb   : > { %v5621_v24 = vpop.f32.mrb[61].mxu0 }
 0x3ce   : > { %v4113_v30 = vpop.f32.mrb[62].mxu0 }
 0x3cf   : > { %v2836_v53 = vadd.f32 %v4113_v30, %v5626_v9  ;;  %v2830_v25 = vpop.f32.mrb[63].mxu0 }
 0x3d0   : > { %v2831_v13 = vadd.f32 %v5626_v9, %v2830_v25 }
 0x3d1   : > { %v2926_v6 = vmax.f32 %v2836_v53, 0.0  ;;  %v2756_v53 = vadd.f32 %v5591_v14, %v5626_v9 }
 0x3d2   : > { %v2925_v22 = vmax.f32 %v2831_v13, 0.0  ;;  %v4116_v26 = vpop.f32.mrb[64].mxu0  ;;  %v2909_v13 = vmax.f32 %v2751_v3, 0.0 }
 0x3d3   : > { %v2846_v4 = vadd.f32 %v4116_v26, %v5626_v9  ;;  %v2840_v10 = vpop.f32.mrb[65].mxu0  ;;  %v2910_v48 = vmax.f32 %v2756_v53, 0.0  ;;  %v2766_v26 = vadd.f32 %v5595_v0, %v5626_v9 }
 0x3d4   : > { %v2841_v62 = vadd.f32 %v5626_v9, %v2840_v10  ;;  %4139 = vmatprep.mubr.msk.f32.mxu1 %vm2945_vm2, %v2925_v22  ;;  %v2761_v22 = vadd.f32 %v5626_v9, %v5597_v5  ;;  %v2776_v5 = vadd.f32 %v5599_v47, %v5626_v9 }
 0x3d5   : > { %4140 = vmatmul.mubr.msk.f32.vlgmr.msra.gmra.mrb[50].mxu1 %vm2945_vm2, %v2926_v6  ;;  %v2928_v57 = vmax.f32 %v2846_v4, 0.0  ;;  %v2771_v4 = vadd.f32 %v5626_v9, %v5601_v17  ;;  %v2912_v14 = vmax.f32 %v2766_v26, 0.0  ;;  %v2786_v17 = vadd.f32 %v5603_v56, %v5626_v9 }
 0x3d6   : > { %v2927_v61 = vmax.f32 %v2841_v62, 0.0  ;;  %4238 = vmatpush3.bf16.msra.mxu1 %v4235_v42  ;;  %v4119_v8 = vpop.f32.mrb[66].mxu0  ;;  %v2911_v6 = vmax.f32 %v2761_v22, 0.0  ;;  %v2781_v62 = vadd.f32 %v5626_v9, %v5605_v35  ;;  %v2914_v0 = vmax.f32 %v2776_v5, 0.0 }
 0x3d7   : > { %v2856_v38 = vadd.f32 %v4119_v8, %v5626_v9  ;;  %v2850_v40 = vpop.f32.mrb[67].mxu0  ;;  %v2913_v10 = vmax.f32 %v2771_v4, 0.0  ;;  %v2791_v8 = vadd.f32 %v5626_v9, %v5609_v16  ;;  %v2916_v47 = vmax.f32 %v2786_v17, 0.0 }
 0x3d8   : > { %v2851_v12 = vadd.f32 %v5626_v9, %v2850_v40  ;;  %4142 = vmatprep.mubr.msk.f32.mxu1 %vm2945_vm2, %v2927_v61  ;;  %v2915_v61 = vmax.f32 %v2781_v62, 0.0  ;;  %v2796_v35 = vadd.f32 %v5607_v45, %v5626_v9  ;;  %v2806_v16 = vadd.f32 %v5611_v37, %v5626_v9 }
 0x3d9   : > { %4143 = vmatmul.mubr.msk.f32.gmra.mrb[52].mxu1 %vm2945_vm2, %v2928_v57  ;;  %v2930_v15 = vmax.f32 %v2856_v38, 0.0  ;;  %v2917_v57 = vmax.f32 %v2791_v8, 0.0  ;;  %v2801_v38 = vadd.f32 %v5626_v9, %v5613_v52  ;;  %v2816_v52 = vadd.f32 %v5615_v51, %v5626_v9  ;;  %v3711_v51 = vld [vmem:[%s5792_s10] ss:$0 sm:$0xff] }
 0x3da   : > { %v2929_v59 = vmax.f32 %v2851_v12, 0.0  ;;  %v4122_v7 = vpop.f32.mrb[68].mxu0  ;;  %v2918_v56 = vmax.f32 %v2796_v35, 0.0  ;;  %v2811_v12 = vadd.f32 %v5626_v9, %v5617_v58  ;;  %v2920_v45 = vmax.f32 %v2806_v16, 0.0 }
 0x3db   : > { %v2866_v46 = vadd.f32 %v4122_v7, %v5626_v9  ;;  %v2860_v23 = vpop.f32.mrb[69].mxu0  ;;  %v2919_v40 = vmax.f32 %v2801_v38, 0.0  ;;  %v2821_v7 = vadd.f32 %v5626_v9, %v5621_v24  ;;  %v2922_v37 = vmax.f32 %v2816_v52, 0.0 }
 0x3dc   : > { %v2861_v33 = vadd.f32 %v5626_v9, %v2860_v23  ;;  %4145 = vmatprep.mubr.msk.f32.mxu1 %vm2945_vm2, %v2929_v59  ;;  %v2921_v59 = vmax.f32 %v2811_v12, 0.0  ;;  %v2826_v58 = vadd.f32 %v5619_v31, %v5626_v9 }
 0x3dd   : > { %4146 = vmatmul.mubr.msk.f32.gmra.mrb[54].mxu1 %vm2945_vm2, %v2930_v15  ;;  %v2932_v18 = vmax.f32 %v2866_v46, 0.0  ;;  %v2923_v15 = vmax.f32 %v2821_v7, 0.0 }
 0x3de   : > { %v2931_v1 = vmax.f32 %v2861_v33, 0.0  ;;  %v4125_v19 = vpop.f32.mrb[70].mxu0  ;;  %v2924_v46 = vmax.f32 %v2826_v58, 0.0 }
 0x3df   : > { %v2876_v21 = vadd.f32 %v4125_v19, %v5626_v9  ;;  %v2870_v49 = vpop.f32.mrb[71].mxu0 }
 0x3e0   : > { %v2871_v39 = vadd.f32 %v5626_v9, %v2870_v49  ;;  %4148 = vmatprep.mubr.msk.f32.mxu1 %vm2945_vm2, %v2931_v1 }
 0x3e1   : > { %4149 = vmatmul.mubr.msk.f32.gmra.mrb[56].mxu1 %vm2945_vm2, %v2932_v18  ;;  %v2934_v32 = vmax.f32 %v2876_v21, 0.0 }
 0x3e2   : > { %v2933_v20 = vmax.f32 %v2871_v39, 0.0  ;;  %v4128_v54 = vpop.f32.mrb[72].mxu0 }
 0x3e3   : > { %v2886_v29 = vadd.f32 %v4128_v54, %v5626_v9  ;;  %v2880_v44 = vpop.f32.mrb[73].mxu0 }
 0x3e4   : > { %v2881_v2 = vadd.f32 %v5626_v9, %v2880_v44  ;;  %4151 = vmatprep.mubr.msk.f32.mxu1 %vm2945_vm2, %v2933_v20 }
 0x3e5   : > { %4152 = vmatmul.mubr.msk.f32.gmra.mrb[58].mxu1 %vm2945_vm2, %v2934_v32  ;;  %v2936_v28 = vmax.f32 %v2886_v29, 0.0 }
 0x3e6   : > { %v2935_v36 = vmax.f32 %v2881_v2, 0.0  ;;  %v4131_v60 = vpop.f32.mrb[74].mxu0 }
 0x3e7   : > { %v2896_v34 = vadd.f32 %v4131_v60, %v5626_v9  ;;  %v2890_v55 = vpop.f32.mrb[75].mxu0 }
 0x3e8   : > { %v2891_v11 = vadd.f32 %v5626_v9, %v2890_v55  ;;  %4154 = vmatprep.mubr.msk.f32.mxu1 %vm2945_vm2, %v2935_v36 }
 0x3e9   : > { %4155 = vmatmul.mubr.msk.f32.gmra.mrb[60].mxu1 %vm2945_vm2, %v2936_v28  ;;  %v2938_v43 = vmax.f32 %v2896_v34, 0.0 }
 0x3ea   : > { %v2937_v50 = vmax.f32 %v2891_v11, 0.0  ;;  %v4134_v27 = vpop.f32.mrb[76].mxu0 }
 0x3eb   : > { %v2906_v41 = vadd.f32 %v4134_v27, %v5626_v9  ;;  %v2900_v63 = vpop.f32.mrb[77].mxu0 }
 0x3ec   : > { %v2901_v42 = vadd.f32 %v5626_v9, %v2900_v63  ;;  %4157 = vmatprep.mubr.msk.f32.mxu1 %vm2945_vm2, %v2937_v50 }
 0x3ed   : > { %4158 = vmatmul.mubr.msk.f32.gmra.mrb[62].mxu1 %vm2945_vm2, %v2938_v43  ;;  %v2940_v25 = vmax.f32 %v2906_v41, 0.0 }
 0x3ee   : > { %v2939_v30 = vmax.f32 %v2901_v42, 0.0 }
 0x3f0   : > { %4160 = vmatprep.mubr.msk.f32.mxu1 %vm2945_vm2, %v2939_v30 }
 0x3f1   : > { %4161 = vmatmul.mubr.msk.f32.gmra.mrb[64].mxu1 %vm2945_vm2, %v2940_v25 }
 0x3f2   : > { %4167 = vmatprep.mubr.msk.f32.mxu1 %vm2945_vm2, %v2909_v13 }
 0x3f5   : > { %4168 = vmatmul.mubr.msk.f32.vlgmr.msra.gmra.mrb[50].mxu1 %vm2945_vm2, %v2910_v48 }
 0x3f6   : > { %4170 = vmatprep.mubr.msk.f32.mxu1 %vm2945_vm2, %v2911_v6 }
 0x3f9   : > { %4171 = vmatmul.mubr.msk.f32.gmra.mrb[52].mxu1 %vm2945_vm2, %v2912_v14 }
 0x3fa   : > { %4173 = vmatprep.mubr.msk.f32.mxu1 %vm2945_vm2, %v2913_v10 }
 0x3fd   : > { %4174 = vmatmul.mubr.msk.f32.gmra.mrb[54].mxu1 %vm2945_vm2, %v2914_v0 }
 0x3fe   : > { %4176 = vmatprep.mubr.msk.f32.mxu1 %vm2945_vm2, %v2915_v61 }
 0x401   : > { %4177 = vmatmul.mubr.msk.f32.gmra.mrb[56].mxu1 %vm2945_vm2, %v2916_v47 }
 0x402   : > { %4179 = vmatprep.mubr.msk.f32.mxu1 %vm2945_vm2, %v2917_v57 }
 0x405   : > { %4180 = vmatmul.mubr.msk.f32.gmra.mrb[58].mxu1 %vm2945_vm2, %v2918_v56 }
 0x406   : > { %4182 = vmatprep.mubr.msk.f32.mxu1 %vm2945_vm2, %v2919_v40 }
 0x409   : > { %4183 = vmatmul.mubr.msk.f32.gmra.mrb[60].mxu1 %vm2945_vm2, %v2920_v45 }
 0x40a   : > { %4185 = vmatprep.mubr.msk.f32.mxu1 %vm2945_vm2, %v2921_v59 }
 0x40d   : > { %4186 = vmatmul.mubr.msk.f32.gmra.mrb[62].mxu1 %vm2945_vm2, %v2922_v37 }
 0x40e   : > { %4188 = vmatprep.mubr.msk.f32.mxu1 %vm2945_vm2, %v2923_v15 }
 0x411   : > { %4189 = vmatmul.mubr.msk.f32.gmra.mrb[64].mxu1 %vm2945_vm2, %v2924_v46 }
 0x4c8   : > { %v4169_v24 = vpop.f32.mrb[50].mxu1 }
 0x4c9   : > { %v3340_v23 = vadd.f32 %v4169_v24, %v3711_v51  ;;  %v3253_v33 = vpop.f32.mrb[51].mxu1 }
 0x4ca   : > { %v3339_v1 = vadd.f32 %v3711_v51, %v3253_v33 }
 0x4cb   : > { %3356 = vst [vmem:[%s5712_s16 + $0x8] sm:$0xff] %v3340_v23 }
 0x4cc   : > { %3355 = vst [vmem:[%s5712_s16] sm:$0xff] %v3339_v1  ;;  %v4172_v31 = vpop.f32.mrb[52].mxu1 }
 0x4cd   : > { %v3342_v9 = vadd.f32 %v4172_v31, %v3711_v51  ;;  %v3263_v19 = vpop.f32.mrb[53].mxu1 }
 0x4ce   : > { %v3341_v18 = vadd.f32 %v3711_v51, %v3263_v19 }
 0x4cf   : > { %3358 = vst [vmem:[%s5712_s16 + $0x18] sm:$0xff] %v3342_v9 }
 0x4d0   : > { %3357 = vst [vmem:[%s5712_s16 + $0x10] sm:$0xff] %v3341_v18  ;;  %v4175_v21 = vpop.f32.mrb[54].mxu1 }
 0x4d1   : > { %v3344_v49 = vadd.f32 %v4175_v21, %v3711_v51  ;;  %v3273_v39 = vpop.f32.mrb[55].mxu1 }
 0x4d2   : > { %v3343_v20 = vadd.f32 %v3711_v51, %v3273_v39 }
 0x4d3   : > { %3360 = vst [vmem:[%s5712_s16 + $0x28] sm:$0xff] %v3344_v49 }
 0x4d4   : > { %3359 = vst [vmem:[%s5712_s16 + $0x20] sm:$0xff] %v3343_v20  ;;  %v4178_v54 = vpop.f32.mrb[56].mxu1 }
 0x4d5   : > { %v3346_v32 = vadd.f32 %v4178_v54, %v3711_v51  ;;  %v3283_v29 = vpop.f32.mrb[57].mxu1 }
 0x4d6   : > { %v3345_v44 = vadd.f32 %v3711_v51, %v3283_v29 }
 0x4d7   : > { %3362 = vst [vmem:[%s5712_s16 + $0x38] sm:$0xff] %v3346_v32 }
 0x4d8   : > { %3361 = vst [vmem:[%s5712_s16 + $0x30] sm:$0xff] %v3345_v44  ;;  %v4181_v2 = vpop.f32.mrb[58].mxu1 }
 0x4d9   : > { %v3348_v36 = vadd.f32 %v4181_v2, %v3711_v51  ;;  %v3293_v60 = vpop.f32.mrb[59].mxu1 }
 0x4da   : > { %v3347_v28 = vadd.f32 %v3711_v51, %v3293_v60 }
 0x4db   : > { %3364 = vst [vmem:[%s5712_s16 + $0x48] sm:$0xff] %v3348_v36 }
 0x4dc   : > { %3363 = vst [vmem:[%s5712_s16 + $0x40] sm:$0xff] %v3347_v28  ;;  %v4184_v34 = vpop.f32.mrb[60].mxu1 }
 0x4dd   : > { %v3350_v55 = vadd.f32 %v4184_v34, %v3711_v51  ;;  %v3303_v11 = vpop.f32.mrb[61].mxu1 }
 0x4de   : > { %v3349_v50 = vadd.f32 %v3711_v51, %v3303_v11 }
 0x4df   : > { %3366 = vst [vmem:[%s5712_s16 + $0x58] sm:$0xff] %v3350_v55 }
 0x4e0   : > { %3365 = vst [vmem:[%s5712_s16 + $0x50] sm:$0xff] %v3349_v50  ;;  %v4187_v27 = vpop.f32.mrb[62].mxu1 }
 0x4e1   : > { %v3352_v43 = vadd.f32 %v4187_v27, %v3711_v51  ;;  %v3313_v41 = vpop.f32.mrb[63].mxu1 }
 0x4e2   : > { %v3351_v63 = vadd.f32 %v3711_v51, %v3313_v41 }
 0x4e3   : > { %3368 = vst [vmem:[%s5712_s16 + $0x68] sm:$0xff] %v3352_v43 }
 0x4e4   : > { %3367 = vst [vmem:[%s5712_s16 + $0x60] sm:$0xff] %v3351_v63  ;;  %v4190_v3 = vpop.f32.mrb[64].mxu1 }
 0x4e5   : > { %v3354_v42 = vadd.f32 %v4190_v3, %v3711_v51  ;;  %v3323_v30 = vpop.f32.mrb[65].mxu1 }
 0x4e6   : > { %v3353_v53 = vadd.f32 %v3711_v51, %v3323_v30 }
 0x4e7   : > { %3370 = vst [vmem:[%s5712_s16 + $0x78] sm:$0xff] %v3354_v42 }
 0x4e8   : > { %3369 = vst [vmem:[%s5712_s16 + $0x70] sm:$0xff] %v3353_v53 }
 0x4e9   : > { %4316 = shalt.err (!%p4313_p5)
}
 0x4ea   : > { %s4317_s16 = scalar_lea.hbm %s5734_s21, 2048  ;;  %s4321_s15 = scalar_lea.hbm %s5793_s11, 4096 }
 0x4eb   : > { %p4318_p7 = scmp.ne.s32.totalorder %s5734_s21, %s4317_s16  ;;  %p4322_p12 = scmp.lt.u32.totalorder %s5734_s21, %s5793_s11 }
 0x4ec   : > { %p4323_p13 = scmp.lt.u32.totalorder %s4321_s15, %s4317_s16  ;;  %p4325_p1 = scmp.lt.u32.totalorder %s4317_s16, %s5734_s21 }
 0x4ed   : > { %p4319_p10 = pnand %p4318_p7, %p4469_p6 }
 0x4ee   : > { %p4324_p0 = por %p4323_p13, %p4322_p12 }
 0x4ef   : > { %p4320_p11 = pneg %p4319_p10 }
 0x4f0   : > { %p4326_p2 = por %p4325_p1, %p4324_p0 }
 0x4f2   : > { %p4327_p3 = pnand %p4326_p2, %p4320_p11 }
 0x4f4   : > { %4330 = shalt.err (!%p4327_p3)
}
 0x4f5   : > { %s4369_s14 = smov 128   ;;  %s4370_s25 = smov 8  }
 0x4f6   : > { %s5800_s0 = scalar_lea.sflag [#allocation4], %s4565_s13 }
 0x4f7   : > { %4259 = dma.vmem_to_hbm [thread:$0]  (%p4469_p6), %s5736_s24, 2048, %s5734_s21, %s5800_s0, %s4369_s14, %s4369_s14, %s4370_s25  }
 0x4f8 PF: > { %s3400_s12 = sand.u32 1, %s4353_s17   ;;  %p4262_p4 = pnand %p3455_p9, %p4473_p8 }
 0x4f9   : > { %s3401_s16 = scalar_lea.sflag [#allocation4], %s3400_s12 }
 0x4fa   : > { %4348 = dma.done.wait (!%p4262_p4), %s3401_s16, 2048  }
 0x4fb   : > { %4350 = vsyncadd (!%p4262_p4), %s3401_s16, 4294965248  ;;  %p21_p5 = scmp.ge.s32.totalorder %s4454_s23, 4   ;;  %s5801_s17 = smov %s4357_s18 }
 0x4fc   : > { %s5802_s18 = smov %s4361_s19  ;;  %s5803_s19 = smov %s4467_s26 }
 0x4fd   : > { %s5804_s20 = smov %s4454_s23  ;;  %23 = sbr.rel (!%p21_p5) target bundleno = 5 (0x5), region = 147 }
 0x504   :  { %3406 = vsyncpa [#allocation4], 1 }
 0x505   :  { %3408 = vsyncpa [#allocation4 + $0x1], 1 }

</bundles_post_ra>
